<compile_context>
chip_gen: v6e
topology: v6e:2x2x1
jax: 0.10.0
libtpu: 0.0.40
codegen_flags: <defaults>
</compile_context>

<pallas_src>
import numpy as np
import jax
import jax.numpy as jnp
from jax.experimental import pallas as pl
from jax.experimental.pallas import tpu as pltpu

# ---------------------------------------------------------------------------
# Pallas kernel: elementwise (loss < thr) over large, lane-dense tiles.
# ---------------------------------------------------------------------------
_BLOCK_COLS = 1024       # lane-dense last dim (multiple of 128) -> unmasked vst
_MAX_BLOCK_ROWS = 256    # 256 x 1024 x 4 B = 1 MiB per block buffer
_SMALL_N = 16384         # below this, a fused XLA compare beats a kernel launch


def _mask_kernel(thr_ref, loss_ref, out_ref):
    # thr_ref: (1,) f32 in SMEM; loss_ref / out_ref: (block_rows, 1024) VMEM tiles.
    out_ref[...] = (loss_ref[...] < thr_ref[0]).astype(out_ref.dtype)


@jax.jit
def _mask_xla(loss, thr):
    # Plain fused compare: optimal for small N and for the warm-up (+inf) path.
    return (loss < thr[0]).astype(loss.dtype)


@jax.jit
def _mask_pallas(loss, thr):
    """(loss < thr) for a large 1-D f32 `loss`, tiled as (block_rows, 1024)."""
    n = loss.shape[0]
    rows = -(-n // _BLOCK_COLS)
    n_pad = rows * _BLOCK_COLS

    x = loss
    if n_pad != n:
        # TODO(synk): this pad (and the final slice) each cost one extra HBM
        # pass; fully fusing the tail mask would need a 1-D / manual-DMA kernel.
        x = jnp.pad(x, (0, n_pad - n), constant_values=jnp.inf)
    x2d = x.reshape(rows, _BLOCK_COLS)

    # Big blocks (>= 0.25 MiB per buffer) so per-grid-step overhead is hidden.
    block_rows = min(_MAX_BLOCK_ROWS, (rows // 8) * 8)   # multiple of 8, <= rows
    grid = (pl.cdiv(rows, block_rows),)                  # partial last block OK

    out2d = pl.pallas_call(
        _mask_kernel,
        out_shape=jax.ShapeDtypeStruct((rows, _BLOCK_COLS), jnp.float32),
        grid=grid,
        in_specs=[
            pl.BlockSpec(memory_space=pltpu.SMEM),                   # threshold
            pl.BlockSpec((block_rows, _BLOCK_COLS), lambda i: (i, 0)),
        ],
        out_specs=pl.BlockSpec((block_rows, _BLOCK_COLS), lambda i: (i, 0)),
        compiler_params=pltpu.CompilerParams(
            dimension_semantics=("parallel",),     # megacore-shardable on v7x
            vmem_limit_bytes=32 * 1024 * 1024,     # safe on v5e/v6e/v7x
        ),
    )(thr, x2d)

    return out2d.reshape(-1)[:n]


def threshold_mask(loss, threshold):
    """Elementwise (loss < threshold).astype(loss.dtype) for a 1-D loss vector.

    `threshold` is a host-side Python/NumPy scalar (as in the original module).
    Large finite-threshold vectors go through the Pallas kernel; small vectors
    and the +inf warm-up threshold use a fused XLA compare.
    """
    loss = jnp.asarray(loss, dtype=jnp.float32).reshape(-1)
    thr = jnp.full((1,), threshold, dtype=jnp.float32)
    use_pallas = loss.shape[0] >= _SMALL_N and np.isfinite(float(threshold))
    if use_pallas:
        return _mask_pallas(loss, thr)
    return _mask_xla(loss, thr)


class LossDropper:
    """JAX/Pallas port of the PyTorch LossDropper module.

    Stateful bookkeeping (counts, circular buffer, percentile recompute) is
    host-side Python/NumPy, exactly as in the original; the elementwise mask is
    computed on-device (Pallas kernel for large vectors, fused XLA otherwise).
    """

    def __init__(self, dropc=0.4, min_count=10000, recompute=10000, verbose=True):
        self.keepc = 1.0 - dropc
        self.count = 0
        self.min_count = min_count
        self.recompute = recompute
        self.last_computed = 0
        self.percentile_val = 100000000.0
        self.cur_idx = 0
        self.verbose = verbose
        self.vals = np.zeros(self.recompute, dtype=np.float32)

    def __call__(self, loss):
        if loss is None:
            return loss

        loss_dev = jnp.asarray(loss, dtype=jnp.float32).reshape(-1)
        n = loss_dev.shape[0]
        # Host-side copy is required every step (the values feed np.percentile),
        # matching the original's .detach().cpu().numpy().
        loss_np = np.asarray(loss_dev)

        self.last_computed += n
        self.count += n

        if self.count < self.vals.size:
            self.vals[self.count - n:self.count] = loss_np
            self.cur_idx += n
            # Warm-up: threshold is +inf -> fused XLA compare, no Pallas launch.
            return threshold_mask(loss_dev, np.inf)
        else:
            # Vectorized circular-buffer update (replaces the original's
            # per-element Python loop; identical final state and wraparound).
            L = self.vals.size
            if n >= L:
                tail = loss_np[n - L:]
                new_idx = (self.cur_idx + n) % L
                k = L - new_idx
                self.vals[new_idx:] = tail[:k]
                self.vals[:new_idx] = tail[k:]
                self.cur_idx = new_idx
            else:
                end = self.cur_idx + n
                if end <= L:
                    self.vals[self.cur_idx:end] = loss_np
                else:
                    k = L - self.cur_idx
                    self.vals[self.cur_idx:] = loss_np[:k]
                    self.vals[:end - L] = loss_np[k:]
                self.cur_idx = end % L

        if self.count < self.min_count:
            return threshold_mask(loss_dev, np.inf)

        if self.last_computed > self.recompute:
            # TODO(synk): np.percentile (sort + interpolation) stays host-side,
            # matching the original module's numpy implementation.
            self.percentile_val = float(np.percentile(self.vals, self.keepc * 100))
            if self.verbose:
                print("Using cutoff", self.percentile_val)
            self.last_computed = 0

        return threshold_mask(loss_dev, self.percentile_val)


if __name__ == "__main__":
    key = jax.random.PRNGKey(0)

    # --- 1. Direct check of the Pallas path against an XLA reference. -------
    N_BIG = 200_000   # non-multiple of 1024: exercises padding + partial block
    key, sub = jax.random.split(key)
    big_loss = jnp.abs(jax.random.normal(sub, (N_BIG,), dtype=jnp.float32))
    thr_val = 0.6
    out = jax.block_until_ready(threshold_mask(big_loss, thr_val))
    ref = (big_loss < jnp.float32(thr_val)).astype(jnp.float32)
    assert out.shape == (N_BIG,) and out.dtype == jnp.float32
    assert bool(jnp.all(out == ref))

    # --- 2. Warm-up path of the dropper (threshold = +inf -> all ones). -----
    warm = LossDropper(dropc=0.4, min_count=10000, recompute=10000, verbose=False)
    key, sub = jax.random.split(key)
    small_loss = jnp.abs(jax.random.normal(sub, (256,), dtype=jnp.float32))
    m = jax.block_until_ready(warm(small_loss))
    assert m.shape == (256,) and bool(jnp.all(m == 1.0))

    # --- 3. Steady-state percentile path, small batches (XLA compare path). -
    dropper = LossDropper(dropc=0.4, min_count=128, recompute=128, verbose=False)
    mask = None
    for _ in range(3):
        key, sub = jax.random.split(key)
        loss = jnp.abs(jax.random.normal(sub, (256,), dtype=jnp.float32))
        mask = dropper(loss)
    mask = jax.block_until_ready(mask)
    assert mask.shape == (256,) and mask.dtype == jnp.float32
    assert bool(jnp.all((mask == 0.0) | (mask == 1.0)))
    assert 0.0 < float(jnp.mean(mask)) <= 1.0

    # --- 4. Steady-state percentile path, large batch (Pallas mask path). ---
    dropper2 = LossDropper(dropc=0.4, min_count=1000, recompute=1000, verbose=False)
    mask2 = jax.block_until_ready(dropper2(big_loss))
    ref2 = (big_loss < jnp.float32(dropper2.percentile_val)).astype(jnp.float32)
    assert bool(jnp.all(mask2 == ref2))
    assert 0.4 < float(jnp.mean(mask2)) < 0.8

    print("KERNEL_OK")
</pallas_src>

<mosaic_0001>
module attributes {stable_mosaic.version = 11 : i64} {
  func.func @_mask_kernel(%arg0: i32, %arg1: memref<1xf32, #tpu.memory_space<smem>>, %arg2: memref<192x1024xf32, #tpu.memory_space<vmem>>, %arg3: memref<192x1024xf32, #tpu.memory_space<vmem>>) attributes {dimension_semantics = [#tpu.dimension_semantics<parallel>], iteration_bounds = array<i64: 2>, scalar_prefetch = 0 : i64, scratch_operands = 0 : i64, tpu.core_type = #tpu.core_type<tc>, window_params = [{transform_indices = @transform_0, window_bounds = array<i64: 1>}, {transform_indices = @transform_1, window_bounds = array<i64: 192, 1024>}, {transform_indices = @transform_2, window_bounds = array<i64: 192, 1024>}]} {
    %c0 = arith.constant 0 : index
    %c0_0 = arith.constant 0 : index
    %0 = vector.load %arg2[%c0, %c0_0] : memref<192x1024xf32, #tpu.memory_space<vmem>>, vector<192x1024xf32>
    %c0_1 = arith.constant 0 : index
    %1 = memref.load %arg1[%c0_1] : memref<1xf32, #tpu.memory_space<smem>>
    %2 = vector.broadcast %1 : f32 to vector<192x1024xf32>
    %3 = arith.cmpf olt, %0, %2 : vector<192x1024xf32>
    %4 = arith.extui %3 : vector<192x1024xi1> to vector<192x1024xi32>
    %5 = arith.sitofp %4 : vector<192x1024xi32> to vector<192x1024xf32>
    %c0_2 = arith.constant 0 : index
    %c0_3 = arith.constant 0 : index
    %6 = vector.load %arg3[%c0_2, %c0_3] : memref<192x1024xf32, #tpu.memory_space<vmem>>, vector<192x1024xf32>
    tpu.vector_store %arg3[%c0_2, %c0_3], %5 {strides = array<i32>} : memref<192x1024xf32, #tpu.memory_space<vmem>>, vector<192x1024xf32>,
    return
  }
  func.func @transform_0(%arg0: i32) -> i32 {
    %c0_i32 = arith.constant 0 : i32
    %c0_i32_0 = arith.constant 0 : i32
    return %c0_i32 : i32
  }
  func.func @transform_1(%arg0: i32) -> (i32, i32) {
    %c0_i32 = arith.constant 0 : i32
    %c0_i32_0 = arith.constant 0 : i32
    return %arg0, %c0_i32 : i32, i32
  }
  func.func @transform_2(%arg0: i32) -> (i32, i32) {
    %c0_i32 = arith.constant 0 : i32
    %c0_i32_0 = arith.constant 0 : i32
    return %arg0, %c0_i32 : i32, i32
  }
}

</mosaic_0001>

<bundles_post_ra>
// kernel: _mask_pallas.1
= control target key start
LH: loop header
LB: loop body
LE: loop exit
PB: predicated region body
PF: predicated region fallthrough
CT: control target
= control target key end

     0   :  { %s2894_s0 = inlined_call_operand.<no memory space> [shape: f32[1], index: 0, kind: input, shape index: {}]   ;;  %s2895_s1 = inlined_call_operand.vmem [shape: f32[196,1024], index: 1, kind: input, shape index: {}]   ;;  %s2896_s2 = inlined_call_operand.vmem [shape: f32[196,1024], index: 2, kind: output, shape index: {}]  }
   0x1   :  { %7 = sst [smem:[#allocation2]] %s2894_s0 }
   0x2   :  { %s1852_s11 = smov 0   ;;  %s1854_s12 = smov 0  }
   0x3   :  { %s1856_s13 = smov 0  }
   0x4 LB: > { %s1863_s14 = sadd.s32 4294967295, %s1799_s13   ;;  %s1865_s0 = sadd.s32 1, %s1799_s13   ;;  %s1799_s13 = sphi %s1856_s13, %s2908_s13   ;;  %s1795_s12 = sphi %s1854_s12, %s2907_s12   ;;  %s1791_s11 = sphi %s1852_s11, %s2906_s11  }
   0x5   : > { %s64_s15 = ssub.s32 %s1799_s13, %s1865_s0  ;;  %s67_s16 = sadd.s32 1, %s1795_s12 }
   0x6   : > { %p65_p0 = scmp.eq.s32.totalorder %s64_s15, 0  ;;  %p77_p1 = scmp.ne.s32.totalorder %s1795_s12, %s1791_s11 }
   0x7   : > { %p78_p2 = scmp.eq.s32.totalorder %s1863_s14, 1  ;;  %p1436_p3 = scmp.ge.s32.totalorder %s1799_s13, 1 }
   0x8   : > { %s1872_s17 = scalar_select %p65_p0, %s1795_s12, %s67_s16  }
   0x9   : > { %p1874_p4 = por %p78_p2, %p77_p1  ;;  %p125_p5 = scmp.lt.s32.totalorder %s1799_s13, 3 }
   0xb   : > { %p126_p6 = pnand %p1436_p3, %p125_p5 }
   0xc   : > { %s149_s19 = sand.u32 (!%p126_p6), 1, %s1791_s11   ;;  %s1879_s20 = smul.u32 (!%p126_p6), 24, %s1863_s14 }
   0xd   : > { %129 = sbr.rel (%p126_p6) target bundleno = 186 (0xba), region = 28  ;;  %s367_s21 = sld [smem:[#allocation2]] (!%p126_p6) }
   0xe   : > { %p158_p7 = scmp.lt.s32.totalorder (!%p126_p6), %s1879_s20, 24  ;;  %s1655_s22 = smul.u32 (!%p126_p6), 1536, %s149_s19 }
  0x10   : > { %s1906_s28 = scalar_lea.vmem (!%p126_p6), [#allocation3], %s1655_s22  }
  0x12   : > { %s159_s23 = scalar_select %p158_p7, %s1879_s20, 24  ;;  %v1833_v7 = vmov 0.0  }
  0x13   : > { %v1888_v0 = vstv %s367_s21  ;;  %s1145_s29 = ssub.s32 (%p1874_p4), 25, %s1879_s20  ;;  %s1654_s30 = smul.u32 (%p1874_p4), 1536, %s1863_s14 }
  0x14   : > { %s1648_s24 = sshll.u32 %s159_s23, 6  ;;  %p1146_p8 = scmp.lt.s32.totalorder (%p1874_p4), %s1145_s29, 24 }
  0x15   : > { %s1886_s27 = scalar_lea.vmem %s2895_s1, %s1648_s24  ;;  %s2667_s5 = scalar_lea.vmem (%p1874_p4), %s2896_s2, %s1654_s30  }
  0x16   : > { %v175_v1 = vld [vmem:[%s1886_s27] sm:$0xff]  ;;  %v176_v2 = vld [vmem:[%s1886_s27 + $0x8] sm:$0xff]  ;;  %v177_v3 = vld [vmem:[%s1886_s27 + $0x10] sm:$0xff] }
  0x17   : > { %vm369_vm0 = vcmp.lt.f32.partialorder %v175_v1, %v1888_v0  ;;  %vm370_vm1 = vcmp.lt.f32.partialorder %v176_v2, %v1888_v0  ;;  %vm371_vm2 = vcmp.lt.f32.partialorder %v177_v3, %v1888_v0  ;;  %v178_v4 = vld [vmem:[%s1886_s27 + $0x18] sm:$0xff]  ;;  %v179_v5 = vld [vmem:[%s1886_s27 + $0x20] sm:$0xff]  ;;  %v180_v6 = vld [vmem:[%s1886_s27 + $0x28] sm:$0xff] }
  0x18   : > { %v1439_v8 = vsel %vm369_vm0, 1.0, %v1833_v7  ;;  %v1440_v9 = vsel %vm370_vm1, 1.0, %v1833_v7  ;;  %v1441_v10 = vsel %vm371_vm2, 1.0, %v1833_v7  ;;  %vm372_vm3 = vcmp.lt.f32.partialorder %v178_v4, %v1888_v0  ;;  %v181_v11 = vld [vmem:[%s1886_s27 + $0x30] sm:$0xff]  ;;  %v182_v12 = vld [vmem:[%s1886_s27 + $0x38] sm:$0xff]  ;;  %v183_v13 = vld [vmem:[%s1886_s27 + $0x40] sm:$0xff] }
  0x19   : > { %945 = vst [vmem:[%s1906_s28] sm:$0xff] %v1439_v8  ;;  %946 = vst [vmem:[%s1906_s28 + $0x8] sm:$0xff] %v1440_v9  ;;  %v1442_v14 = vsel %vm372_vm3, 1.0, %v1833_v7  ;;  %vm373_vm4 = vcmp.lt.f32.partialorder %v179_v5, %v1888_v0  ;;  %vm374_vm5 = vcmp.lt.f32.partialorder %v180_v6, %v1888_v0  ;;  %vm375_vm6 = vcmp.lt.f32.partialorder %v181_v11, %v1888_v0  ;;  %v184_v15 = vld [vmem:[%s1886_s27 + $0x48] sm:$0xff]  ;;  %v185_v16 = vld [vmem:[%s1886_s27 + $0x50] sm:$0xff] }
  0x1a   : > { %947 = vst [vmem:[%s1906_s28 + $0x10] sm:$0xff] %v1441_v10  ;;  %v186_v17 = vld [vmem:[%s1886_s27 + $0x58] sm:$0xff]  ;;  %948 = vst [vmem:[%s1906_s28 + $0x18] sm:$0xff] %v1442_v14  ;;  %v1443_v18 = vsel %vm373_vm4, 1.0, %v1833_v7  ;;  %v1444_v19 = vsel %vm374_vm5, 1.0, %v1833_v7  ;;  %v1445_v20 = vsel %vm375_vm6, 1.0, %v1833_v7  ;;  %vm376_vm7 = vcmp.lt.f32.partialorder %v182_v12, %v1888_v0 }
  0x1b   : > { %v187_v21 = vld [vmem:[%s1886_s27 + $0x60] sm:$0xff]  ;;  %v188_v22 = vld [vmem:[%s1886_s27 + $0x68] sm:$0xff]  ;;  %v189_v23 = vld [vmem:[%s1886_s27 + $0x70] sm:$0xff]  ;;  %949 = vst [vmem:[%s1906_s28 + $0x20] sm:$0xff] %v1443_v18  ;;  %v1446_v24 = vsel %vm376_vm7, 1.0, %v1833_v7  ;;  %vm377_vm8 = vcmp.lt.f32.partialorder %v183_v13, %v1888_v0  ;;  %vm378_vm9 = vcmp.lt.f32.partialorder %v184_v15, %v1888_v0  ;;  %vm379_vm10 = vcmp.lt.f32.partialorder %v185_v16, %v1888_v0 }
  0x1c   : > { %950 = vst [vmem:[%s1906_s28 + $0x28] sm:$0xff] %v1444_v19  ;;  %951 = vst [vmem:[%s1906_s28 + $0x30] sm:$0xff] %v1445_v20  ;;  %v190_v25 = vld [vmem:[%s1886_s27 + $0x78] sm:$0xff]  ;;  %v1447_v26 = vsel %vm377_vm8, 1.0, %v1833_v7  ;;  %v1448_v27 = vsel %vm378_vm9, 1.0, %v1833_v7  ;;  %v1449_v28 = vsel %vm379_vm10, 1.0, %v1833_v7  ;;  %vm380_vm11 = vcmp.lt.f32.partialorder %v186_v17, %v1888_v0 }
  0x1d   : > { %952 = vst [vmem:[%s1906_s28 + $0x38] sm:$0xff] %v1446_v24  ;;  %v191_v29 = vld [vmem:[%s1886_s27 + $0x80] sm:$0xff]  ;;  %v192_v30 = vld [vmem:[%s1886_s27 + $0x88] sm:$0xff]  ;;  %v193_v31 = vld [vmem:[%s1886_s27 + $0x90] sm:$0xff]  ;;  %v1450_v32 = vsel %vm380_vm11, 1.0, %v1833_v7  ;;  %vm381_vm12 = vcmp.lt.f32.partialorder %v187_v21, %v1888_v0  ;;  %vm382_vm13 = vcmp.lt.f32.partialorder %v188_v22, %v1888_v0  ;;  %vm383_vm14 = vcmp.lt.f32.partialorder %v189_v23, %v1888_v0 }
  0x1e   : > { %953 = vst [vmem:[%s1906_s28 + $0x40] sm:$0xff] %v1447_v26  ;;  %954 = vst [vmem:[%s1906_s28 + $0x48] sm:$0xff] %v1448_v27  ;;  %v194_v33 = vld [vmem:[%s1886_s27 + $0x98] sm:$0xff]  ;;  %v1451_v34 = vsel %vm381_vm12, 1.0, %v1833_v7  ;;  %v1452_v35 = vsel %vm382_vm13, 1.0, %v1833_v7  ;;  %v1453_v36 = vsel %vm383_vm14, 1.0, %v1833_v7  ;;  %vm384_vm15 = vcmp.lt.f32.partialorder %v190_v25, %v1888_v0 }
  0x1f   : > { %955 = vst [vmem:[%s1906_s28 + $0x50] sm:$0xff] %v1449_v28  ;;  %956 = vst [vmem:[%s1906_s28 + $0x58] sm:$0xff] %v1450_v32  ;;  %v195_v37 = vld [vmem:[%s1886_s27 + $0xa0] sm:$0xff]  ;;  %v196_v38 = vld [vmem:[%s1886_s27 + $0xa8] sm:$0xff]  ;;  %v1454_v40 = vsel %vm384_vm15, 1.0, %v1833_v7  ;;  %vm385_vm0 = vcmp.lt.f32.partialorder %v191_v29, %v1888_v0  ;;  %vm386_vm1 = vcmp.lt.f32.partialorder %v192_v30, %v1888_v0  ;;  %vm387_vm2 = vcmp.lt.f32.partialorder %v193_v31, %v1888_v0 }
  0x20   : > { %v197_v39 = vld [vmem:[%s1886_s27 + $0xb0] sm:$0xff]  ;;  %957 = vst [vmem:[%s1906_s28 + $0x60] sm:$0xff] %v1451_v34  ;;  %958 = vst [vmem:[%s1906_s28 + $0x68] sm:$0xff] %v1452_v35  ;;  %v198_v41 = vld [vmem:[%s1886_s27 + $0xb8] sm:$0xff]  ;;  %v1455_v42 = vsel %vm385_vm0, 1.0, %v1833_v7  ;;  %v1456_v43 = vsel %vm386_vm1, 1.0, %v1833_v7  ;;  %vm388_vm3 = vcmp.lt.f32.partialorder %v194_v33, %v1888_v0  ;;  %vm389_vm4 = vcmp.lt.f32.partialorder %v195_v37, %v1888_v0 }
  0x21   : > { %959 = vst [vmem:[%s1906_s28 + $0x70] sm:$0xff] %v1453_v36  ;;  %960 = vst [vmem:[%s1906_s28 + $0x78] sm:$0xff] %v1454_v40  ;;  %v1457_v44 = vsel %vm387_vm2, 1.0, %v1833_v7  ;;  %v199_v45 = vld [vmem:[%s1886_s27 + $0xc0] sm:$0xff]  ;;  %v200_v46 = vld [vmem:[%s1886_s27 + $0xc8] sm:$0xff]  ;;  %v1458_v48 = vsel %vm388_vm3, 1.0, %v1833_v7  ;;  %vm390_vm5 = vcmp.lt.f32.partialorder %v196_v38, %v1888_v0  ;;  %vm391_vm6 = vcmp.lt.f32.partialorder %v197_v39, %v1888_v0 }
  0x22   : > { %v201_v47 = vld [vmem:[%s1886_s27 + $0xd0] sm:$0xff]  ;;  %961 = vst [vmem:[%s1906_s28 + $0x80] sm:$0xff] %v1455_v42  ;;  %962 = vst [vmem:[%s1906_s28 + $0x88] sm:$0xff] %v1456_v43  ;;  %v202_v49 = vld [vmem:[%s1886_s27 + $0xd8] sm:$0xff]  ;;  %v1459_v50 = vsel %vm389_vm4, 1.0, %v1833_v7  ;;  %v1460_v51 = vsel %vm390_vm5, 1.0, %v1833_v7  ;;  %vm392_vm7 = vcmp.lt.f32.partialorder %v198_v41, %v1888_v0  ;;  %vm393_vm8 = vcmp.lt.f32.partialorder %v199_v45, %v1888_v0 }
  0x23   : > { %963 = vst [vmem:[%s1906_s28 + $0x90] sm:$0xff] %v1457_v44  ;;  %964 = vst [vmem:[%s1906_s28 + $0x98] sm:$0xff] %v1458_v48  ;;  %v1461_v52 = vsel %vm391_vm6, 1.0, %v1833_v7  ;;  %v203_v53 = vld [vmem:[%s1886_s27 + $0xe0] sm:$0xff]  ;;  %v204_v54 = vld [vmem:[%s1886_s27 + $0xe8] sm:$0xff]  ;;  %v1462_v56 = vsel %vm392_vm7, 1.0, %v1833_v7  ;;  %vm394_vm9 = vcmp.lt.f32.partialorder %v200_v46, %v1888_v0  ;;  %vm395_vm10 = vcmp.lt.f32.partialorder %v201_v47, %v1888_v0 }
  0x24   : > { %v205_v55 = vld [vmem:[%s1886_s27 + $0xf0] sm:$0xff]  ;;  %965 = vst [vmem:[%s1906_s28 + $0xa0] sm:$0xff] %v1459_v50  ;;  %966 = vst [vmem:[%s1906_s28 + $0xa8] sm:$0xff] %v1460_v51  ;;  %v206_v57 = vld [vmem:[%s1886_s27 + $0xf8] sm:$0xff]  ;;  %v1463_v58 = vsel %vm393_vm8, 1.0, %v1833_v7  ;;  %v1464_v59 = vsel %vm394_vm9, 1.0, %v1833_v7  ;;  %vm396_vm11 = vcmp.lt.f32.partialorder %v202_v49, %v1888_v0  ;;  %vm397_vm12 = vcmp.lt.f32.partialorder %v203_v53, %v1888_v0 }
  0x25   : > { %967 = vst [vmem:[%s1906_s28 + $0xb0] sm:$0xff] %v1461_v52  ;;  %968 = vst [vmem:[%s1906_s28 + $0xb8] sm:$0xff] %v1462_v56  ;;  %v1465_v60 = vsel %vm395_vm10, 1.0, %v1833_v7  ;;  %v207_v61 = vld [vmem:[%s1886_s27 + $0x100] sm:$0xff]  ;;  %v208_v62 = vld [vmem:[%s1886_s27 + $0x108] sm:$0xff]  ;;  %v1466_v1 = vsel %vm396_vm11, 1.0, %v1833_v7  ;;  %vm398_vm13 = vcmp.lt.f32.partialorder %v204_v54, %v1888_v0  ;;  %vm399_vm14 = vcmp.lt.f32.partialorder %v205_v55, %v1888_v0 }
  0x26   : > { %v209_v63 = vld [vmem:[%s1886_s27 + $0x110] sm:$0xff]  ;;  %969 = vst [vmem:[%s1906_s28 + $0xc0] sm:$0xff] %v1463_v58  ;;  %970 = vst [vmem:[%s1906_s28 + $0xc8] sm:$0xff] %v1464_v59  ;;  %v210_v2 = vld [vmem:[%s1886_s27 + $0x118] sm:$0xff]  ;;  %v1467_v3 = vsel %vm397_vm12, 1.0, %v1833_v7  ;;  %v1468_v4 = vsel %vm398_vm13, 1.0, %v1833_v7  ;;  %vm400_vm15 = vcmp.lt.f32.partialorder %v206_v57, %v1888_v0  ;;  %vm401_vm0 = vcmp.lt.f32.partialorder %v207_v61, %v1888_v0 }
  0x27   : > { %971 = vst [vmem:[%s1906_s28 + $0xd0] sm:$0xff] %v1465_v60  ;;  %972 = vst [vmem:[%s1906_s28 + $0xd8] sm:$0xff] %v1466_v1  ;;  %v1469_v5 = vsel %vm399_vm14, 1.0, %v1833_v7  ;;  %v211_v6 = vld [vmem:[%s1886_s27 + $0x120] sm:$0xff]  ;;  %v212_v8 = vld [vmem:[%s1886_s27 + $0x128] sm:$0xff]  ;;  %v1470_v10 = vsel %vm400_vm15, 1.0, %v1833_v7  ;;  %vm402_vm1 = vcmp.lt.f32.partialorder %v208_v62, %v1888_v0  ;;  %vm403_vm2 = vcmp.lt.f32.partialorder %v209_v63, %v1888_v0 }
  0x28   : > { %v213_v9 = vld [vmem:[%s1886_s27 + $0x130] sm:$0xff]  ;;  %973 = vst [vmem:[%s1906_s28 + $0xe0] sm:$0xff] %v1467_v3  ;;  %974 = vst [vmem:[%s1906_s28 + $0xe8] sm:$0xff] %v1468_v4  ;;  %v214_v11 = vld [vmem:[%s1886_s27 + $0x138] sm:$0xff]  ;;  %v1471_v12 = vsel %vm401_vm0, 1.0, %v1833_v7  ;;  %v1472_v13 = vsel %vm402_vm1, 1.0, %v1833_v7  ;;  %vm404_vm3 = vcmp.lt.f32.partialorder %v210_v2, %v1888_v0  ;;  %vm405_vm4 = vcmp.lt.f32.partialorder %v211_v6, %v1888_v0 }
  0x29   : > { %975 = vst [vmem:[%s1906_s28 + $0xf0] sm:$0xff] %v1469_v5  ;;  %976 = vst [vmem:[%s1906_s28 + $0xf8] sm:$0xff] %v1470_v10  ;;  %v1473_v14 = vsel %vm403_vm2, 1.0, %v1833_v7  ;;  %v215_v15 = vld [vmem:[%s1886_s27 + $0x140] sm:$0xff]  ;;  %v216_v16 = vld [vmem:[%s1886_s27 + $0x148] sm:$0xff]  ;;  %v1474_v18 = vsel %vm404_vm3, 1.0, %v1833_v7  ;;  %vm406_vm5 = vcmp.lt.f32.partialorder %v212_v8, %v1888_v0  ;;  %vm407_vm6 = vcmp.lt.f32.partialorder %v213_v9, %v1888_v0 }
  0x2a   : > { %v217_v17 = vld [vmem:[%s1886_s27 + $0x150] sm:$0xff]  ;;  %977 = vst [vmem:[%s1906_s28 + $0x100] sm:$0xff] %v1471_v12  ;;  %978 = vst [vmem:[%s1906_s28 + $0x108] sm:$0xff] %v1472_v13  ;;  %v218_v19 = vld [vmem:[%s1886_s27 + $0x158] sm:$0xff]  ;;  %v1475_v20 = vsel %vm405_vm4, 1.0, %v1833_v7  ;;  %v1476_v21 = vsel %vm406_vm5, 1.0, %v1833_v7  ;;  %vm408_vm7 = vcmp.lt.f32.partialorder %v214_v11, %v1888_v0  ;;  %vm409_vm8 = vcmp.lt.f32.partialorder %v215_v15, %v1888_v0 }
  0x2b   : > { %979 = vst [vmem:[%s1906_s28 + $0x110] sm:$0xff] %v1473_v14  ;;  %980 = vst [vmem:[%s1906_s28 + $0x118] sm:$0xff] %v1474_v18  ;;  %v1477_v22 = vsel %vm407_vm6, 1.0, %v1833_v7  ;;  %v219_v23 = vld [vmem:[%s1886_s27 + $0x160] sm:$0xff]  ;;  %v220_v24 = vld [vmem:[%s1886_s27 + $0x168] sm:$0xff]  ;;  %v1478_v26 = vsel %vm408_vm7, 1.0, %v1833_v7  ;;  %vm410_vm9 = vcmp.lt.f32.partialorder %v216_v16, %v1888_v0  ;;  %vm411_vm10 = vcmp.lt.f32.partialorder %v217_v17, %v1888_v0 }
  0x2c   : > { %v221_v25 = vld [vmem:[%s1886_s27 + $0x170] sm:$0xff]  ;;  %981 = vst [vmem:[%s1906_s28 + $0x120] sm:$0xff] %v1475_v20  ;;  %982 = vst [vmem:[%s1906_s28 + $0x128] sm:$0xff] %v1476_v21  ;;  %v222_v27 = vld [vmem:[%s1886_s27 + $0x178] sm:$0xff]  ;;  %v1479_v28 = vsel %vm409_vm8, 1.0, %v1833_v7  ;;  %v1480_v29 = vsel %vm410_vm9, 1.0, %v1833_v7  ;;  %vm412_vm11 = vcmp.lt.f32.partialorder %v218_v19, %v1888_v0  ;;  %vm413_vm12 = vcmp.lt.f32.partialorder %v219_v23, %v1888_v0 }
  0x2d   : > { %983 = vst [vmem:[%s1906_s28 + $0x130] sm:$0xff] %v1477_v22  ;;  %984 = vst [vmem:[%s1906_s28 + $0x138] sm:$0xff] %v1478_v26  ;;  %v1481_v30 = vsel %vm411_vm10, 1.0, %v1833_v7  ;;  %v223_v31 = vld [vmem:[%s1886_s27 + $0x180] sm:$0xff]  ;;  %v224_v32 = vld [vmem:[%s1886_s27 + $0x188] sm:$0xff]  ;;  %v1482_v34 = vsel %vm412_vm11, 1.0, %v1833_v7  ;;  %vm414_vm13 = vcmp.lt.f32.partialorder %v220_v24, %v1888_v0  ;;  %vm415_vm14 = vcmp.lt.f32.partialorder %v221_v25, %v1888_v0 }
  0x2e   : > { %v225_v33 = vld [vmem:[%s1886_s27 + $0x190] sm:$0xff]  ;;  %985 = vst [vmem:[%s1906_s28 + $0x140] sm:$0xff] %v1479_v28  ;;  %986 = vst [vmem:[%s1906_s28 + $0x148] sm:$0xff] %v1480_v29  ;;  %v226_v35 = vld [vmem:[%s1886_s27 + $0x198] sm:$0xff]  ;;  %v1483_v36 = vsel %vm413_vm12, 1.0, %v1833_v7  ;;  %v1484_v37 = vsel %vm414_vm13, 1.0, %v1833_v7  ;;  %vm416_vm15 = vcmp.lt.f32.partialorder %v222_v27, %v1888_v0  ;;  %vm417_vm0 = vcmp.lt.f32.partialorder %v223_v31, %v1888_v0 }
  0x2f   : > { %987 = vst [vmem:[%s1906_s28 + $0x150] sm:$0xff] %v1481_v30  ;;  %988 = vst [vmem:[%s1906_s28 + $0x158] sm:$0xff] %v1482_v34  ;;  %v1485_v38 = vsel %vm415_vm14, 1.0, %v1833_v7  ;;  %v227_v39 = vld [vmem:[%s1886_s27 + $0x1a0] sm:$0xff]  ;;  %v228_v40 = vld [vmem:[%s1886_s27 + $0x1a8] sm:$0xff]  ;;  %v1486_v42 = vsel %vm416_vm15, 1.0, %v1833_v7  ;;  %vm418_vm1 = vcmp.lt.f32.partialorder %v224_v32, %v1888_v0  ;;  %vm419_vm2 = vcmp.lt.f32.partialorder %v225_v33, %v1888_v0 }
  0x30   : > { %v229_v41 = vld [vmem:[%s1886_s27 + $0x1b0] sm:$0xff]  ;;  %989 = vst [vmem:[%s1906_s28 + $0x160] sm:$0xff] %v1483_v36  ;;  %990 = vst [vmem:[%s1906_s28 + $0x168] sm:$0xff] %v1484_v37  ;;  %v230_v43 = vld [vmem:[%s1886_s27 + $0x1b8] sm:$0xff]  ;;  %v1487_v44 = vsel %vm417_vm0, 1.0, %v1833_v7  ;;  %v1488_v45 = vsel %vm418_vm1, 1.0, %v1833_v7  ;;  %vm420_vm3 = vcmp.lt.f32.partialorder %v226_v35, %v1888_v0  ;;  %vm421_vm4 = vcmp.lt.f32.partialorder %v227_v39, %v1888_v0 }
  0x31   : > { %991 = vst [vmem:[%s1906_s28 + $0x170] sm:$0xff] %v1485_v38  ;;  %992 = vst [vmem:[%s1906_s28 + $0x178] sm:$0xff] %v1486_v42  ;;  %v1489_v46 = vsel %vm419_vm2, 1.0, %v1833_v7  ;;  %v231_v47 = vld [vmem:[%s1886_s27 + $0x1c0] sm:$0xff]  ;;  %v232_v48 = vld [vmem:[%s1886_s27 + $0x1c8] sm:$0xff]  ;;  %v1490_v50 = vsel %vm420_vm3, 1.0, %v1833_v7  ;;  %vm422_vm5 = vcmp.lt.f32.partialorder %v228_v40, %v1888_v0  ;;  %vm423_vm6 = vcmp.lt.f32.partialorder %v229_v41, %v1888_v0 }
  0x32   : > { %v233_v49 = vld [vmem:[%s1886_s27 + $0x1d0] sm:$0xff]  ;;  %993 = vst [vmem:[%s1906_s28 + $0x180] sm:$0xff] %v1487_v44  ;;  %994 = vst [vmem:[%s1906_s28 + $0x188] sm:$0xff] %v1488_v45  ;;  %v234_v51 = vld [vmem:[%s1886_s27 + $0x1d8] sm:$0xff]  ;;  %v1491_v52 = vsel %vm421_vm4, 1.0, %v1833_v7  ;;  %v1492_v53 = vsel %vm422_vm5, 1.0, %v1833_v7  ;;  %vm424_vm7 = vcmp.lt.f32.partialorder %v230_v43, %v1888_v0  ;;  %vm425_vm8 = vcmp.lt.f32.partialorder %v231_v47, %v1888_v0 }
  0x33   : > { %995 = vst [vmem:[%s1906_s28 + $0x190] sm:$0xff] %v1489_v46  ;;  %996 = vst [vmem:[%s1906_s28 + $0x198] sm:$0xff] %v1490_v50  ;;  %v1493_v54 = vsel %vm423_vm6, 1.0, %v1833_v7  ;;  %v235_v55 = vld [vmem:[%s1886_s27 + $0x1e0] sm:$0xff]  ;;  %v236_v56 = vld [vmem:[%s1886_s27 + $0x1e8] sm:$0xff]  ;;  %v1494_v58 = vsel %vm424_vm7, 1.0, %v1833_v7  ;;  %vm426_vm9 = vcmp.lt.f32.partialorder %v232_v48, %v1888_v0  ;;  %vm427_vm10 = vcmp.lt.f32.partialorder %v233_v49, %v1888_v0 }
  0x34   : > { %v237_v57 = vld [vmem:[%s1886_s27 + $0x1f0] sm:$0xff]  ;;  %997 = vst [vmem:[%s1906_s28 + $0x1a0] sm:$0xff] %v1491_v52  ;;  %998 = vst [vmem:[%s1906_s28 + $0x1a8] sm:$0xff] %v1492_v53  ;;  %v238_v59 = vld [vmem:[%s1886_s27 + $0x1f8] sm:$0xff]  ;;  %v1495_v60 = vsel %vm425_vm8, 1.0, %v1833_v7  ;;  %v1496_v61 = vsel %vm426_vm9, 1.0, %v1833_v7  ;;  %vm428_vm11 = vcmp.lt.f32.partialorder %v234_v51, %v1888_v0  ;;  %vm429_vm12 = vcmp.lt.f32.partialorder %v235_v55, %v1888_v0 }
  0x35   : > { %999 = vst [vmem:[%s1906_s28 + $0x1b0] sm:$0xff] %v1493_v54  ;;  %1000 = vst [vmem:[%s1906_s28 + $0x1b8] sm:$0xff] %v1494_v58  ;;  %v1497_v62 = vsel %vm427_vm10, 1.0, %v1833_v7  ;;  %v239_v63 = vld [vmem:[%s1886_s27 + $0x200] sm:$0xff]  ;;  %v240_v1 = vld [vmem:[%s1886_s27 + $0x208] sm:$0xff]  ;;  %v1498_v3 = vsel %vm428_vm11, 1.0, %v1833_v7  ;;  %vm430_vm13 = vcmp.lt.f32.partialorder %v236_v56, %v1888_v0  ;;  %vm431_vm14 = vcmp.lt.f32.partialorder %v237_v57, %v1888_v0 }
  0x36   : > { %v241_v2 = vld [vmem:[%s1886_s27 + $0x210] sm:$0xff]  ;;  %1001 = vst [vmem:[%s1906_s28 + $0x1c0] sm:$0xff] %v1495_v60  ;;  %1002 = vst [vmem:[%s1906_s28 + $0x1c8] sm:$0xff] %v1496_v61  ;;  %v242_v4 = vld [vmem:[%s1886_s27 + $0x218] sm:$0xff]  ;;  %v1499_v5 = vsel %vm429_vm12, 1.0, %v1833_v7  ;;  %v1500_v6 = vsel %vm430_vm13, 1.0, %v1833_v7  ;;  %vm432_vm15 = vcmp.lt.f32.partialorder %v238_v59, %v1888_v0  ;;  %vm433_vm0 = vcmp.lt.f32.partialorder %v239_v63, %v1888_v0 }
  0x37   : > { %1003 = vst [vmem:[%s1906_s28 + $0x1d0] sm:$0xff] %v1497_v62  ;;  %1004 = vst [vmem:[%s1906_s28 + $0x1d8] sm:$0xff] %v1498_v3  ;;  %v1501_v8 = vsel %vm431_vm14, 1.0, %v1833_v7  ;;  %v243_v9 = vld [vmem:[%s1886_s27 + $0x220] sm:$0xff]  ;;  %v244_v10 = vld [vmem:[%s1886_s27 + $0x228] sm:$0xff]  ;;  %v1502_v12 = vsel %vm432_vm15, 1.0, %v1833_v7  ;;  %vm434_vm1 = vcmp.lt.f32.partialorder %v240_v1, %v1888_v0  ;;  %vm435_vm2 = vcmp.lt.f32.partialorder %v241_v2, %v1888_v0 }
  0x38   : > { %v245_v11 = vld [vmem:[%s1886_s27 + $0x230] sm:$0xff]  ;;  %1005 = vst [vmem:[%s1906_s28 + $0x1e0] sm:$0xff] %v1499_v5  ;;  %1006 = vst [vmem:[%s1906_s28 + $0x1e8] sm:$0xff] %v1500_v6  ;;  %v246_v13 = vld [vmem:[%s1886_s27 + $0x238] sm:$0xff]  ;;  %v1503_v14 = vsel %vm433_vm0, 1.0, %v1833_v7  ;;  %v1504_v15 = vsel %vm434_vm1, 1.0, %v1833_v7  ;;  %vm436_vm3 = vcmp.lt.f32.partialorder %v242_v4, %v1888_v0  ;;  %vm437_vm4 = vcmp.lt.f32.partialorder %v243_v9, %v1888_v0 }
  0x39   : > { %1007 = vst [vmem:[%s1906_s28 + $0x1f0] sm:$0xff] %v1501_v8  ;;  %1008 = vst [vmem:[%s1906_s28 + $0x1f8] sm:$0xff] %v1502_v12  ;;  %v1505_v16 = vsel %vm435_vm2, 1.0, %v1833_v7  ;;  %v247_v17 = vld [vmem:[%s1886_s27 + $0x240] sm:$0xff]  ;;  %v248_v18 = vld [vmem:[%s1886_s27 + $0x248] sm:$0xff]  ;;  %v1506_v20 = vsel %vm436_vm3, 1.0, %v1833_v7  ;;  %vm438_vm5 = vcmp.lt.f32.partialorder %v244_v10, %v1888_v0  ;;  %vm439_vm6 = vcmp.lt.f32.partialorder %v245_v11, %v1888_v0 }
  0x3a   : > { %v249_v19 = vld [vmem:[%s1886_s27 + $0x250] sm:$0xff]  ;;  %1009 = vst [vmem:[%s1906_s28 + $0x200] sm:$0xff] %v1503_v14  ;;  %1010 = vst [vmem:[%s1906_s28 + $0x208] sm:$0xff] %v1504_v15  ;;  %v250_v21 = vld [vmem:[%s1886_s27 + $0x258] sm:$0xff]  ;;  %v1507_v22 = vsel %vm437_vm4, 1.0, %v1833_v7  ;;  %v1508_v23 = vsel %vm438_vm5, 1.0, %v1833_v7  ;;  %vm440_vm7 = vcmp.lt.f32.partialorder %v246_v13, %v1888_v0  ;;  %vm441_vm8 = vcmp.lt.f32.partialorder %v247_v17, %v1888_v0 }
  0x3b   : > { %1011 = vst [vmem:[%s1906_s28 + $0x210] sm:$0xff] %v1505_v16  ;;  %1012 = vst [vmem:[%s1906_s28 + $0x218] sm:$0xff] %v1506_v20  ;;  %v1509_v24 = vsel %vm439_vm6, 1.0, %v1833_v7  ;;  %v251_v25 = vld [vmem:[%s1886_s27 + $0x260] sm:$0xff]  ;;  %v252_v26 = vld [vmem:[%s1886_s27 + $0x268] sm:$0xff]  ;;  %v1510_v28 = vsel %vm440_vm7, 1.0, %v1833_v7  ;;  %vm442_vm9 = vcmp.lt.f32.partialorder %v248_v18, %v1888_v0  ;;  %vm443_vm10 = vcmp.lt.f32.partialorder %v249_v19, %v1888_v0 }
  0x3c   : > { %v253_v27 = vld [vmem:[%s1886_s27 + $0x270] sm:$0xff]  ;;  %1013 = vst [vmem:[%s1906_s28 + $0x220] sm:$0xff] %v1507_v22  ;;  %1014 = vst [vmem:[%s1906_s28 + $0x228] sm:$0xff] %v1508_v23  ;;  %v254_v29 = vld [vmem:[%s1886_s27 + $0x278] sm:$0xff]  ;;  %v1511_v30 = vsel %vm441_vm8, 1.0, %v1833_v7  ;;  %v1512_v31 = vsel %vm442_vm9, 1.0, %v1833_v7  ;;  %vm444_vm11 = vcmp.lt.f32.partialorder %v250_v21, %v1888_v0  ;;  %vm445_vm12 = vcmp.lt.f32.partialorder %v251_v25, %v1888_v0 }
  0x3d   : > { %1015 = vst [vmem:[%s1906_s28 + $0x230] sm:$0xff] %v1509_v24  ;;  %1016 = vst [vmem:[%s1906_s28 + $0x238] sm:$0xff] %v1510_v28  ;;  %v1513_v32 = vsel %vm443_vm10, 1.0, %v1833_v7  ;;  %v255_v33 = vld [vmem:[%s1886_s27 + $0x280] sm:$0xff]  ;;  %v256_v34 = vld [vmem:[%s1886_s27 + $0x288] sm:$0xff]  ;;  %v1514_v36 = vsel %vm444_vm11, 1.0, %v1833_v7  ;;  %vm446_vm13 = vcmp.lt.f32.partialorder %v252_v26, %v1888_v0  ;;  %vm447_vm14 = vcmp.lt.f32.partialorder %v253_v27, %v1888_v0 }
  0x3e   : > { %v257_v35 = vld [vmem:[%s1886_s27 + $0x290] sm:$0xff]  ;;  %1017 = vst [vmem:[%s1906_s28 + $0x240] sm:$0xff] %v1511_v30  ;;  %1018 = vst [vmem:[%s1906_s28 + $0x248] sm:$0xff] %v1512_v31  ;;  %v258_v37 = vld [vmem:[%s1886_s27 + $0x298] sm:$0xff]  ;;  %v1515_v38 = vsel %vm445_vm12, 1.0, %v1833_v7  ;;  %v1516_v39 = vsel %vm446_vm13, 1.0, %v1833_v7  ;;  %vm448_vm15 = vcmp.lt.f32.partialorder %v254_v29, %v1888_v0  ;;  %vm449_vm0 = vcmp.lt.f32.partialorder %v255_v33, %v1888_v0 }
  0x3f   : > { %1019 = vst [vmem:[%s1906_s28 + $0x250] sm:$0xff] %v1513_v32  ;;  %1020 = vst [vmem:[%s1906_s28 + $0x258] sm:$0xff] %v1514_v36  ;;  %v1517_v40 = vsel %vm447_vm14, 1.0, %v1833_v7  ;;  %v259_v41 = vld [vmem:[%s1886_s27 + $0x2a0] sm:$0xff]  ;;  %v260_v42 = vld [vmem:[%s1886_s27 + $0x2a8] sm:$0xff]  ;;  %v1518_v44 = vsel %vm448_vm15, 1.0, %v1833_v7  ;;  %vm450_vm1 = vcmp.lt.f32.partialorder %v256_v34, %v1888_v0  ;;  %vm451_vm2 = vcmp.lt.f32.partialorder %v257_v35, %v1888_v0 }
  0x40   : > { %v261_v43 = vld [vmem:[%s1886_s27 + $0x2b0] sm:$0xff]  ;;  %1021 = vst [vmem:[%s1906_s28 + $0x260] sm:$0xff] %v1515_v38  ;;  %1022 = vst [vmem:[%s1906_s28 + $0x268] sm:$0xff] %v1516_v39  ;;  %v262_v45 = vld [vmem:[%s1886_s27 + $0x2b8] sm:$0xff]  ;;  %v1519_v46 = vsel %vm449_vm0, 1.0, %v1833_v7  ;;  %v1520_v47 = vsel %vm450_vm1, 1.0, %v1833_v7  ;;  %vm452_vm3 = vcmp.lt.f32.partialorder %v258_v37, %v1888_v0  ;;  %vm453_vm4 = vcmp.lt.f32.partialorder %v259_v41, %v1888_v0 }
  0x41   : > { %1023 = vst [vmem:[%s1906_s28 + $0x270] sm:$0xff] %v1517_v40  ;;  %1024 = vst [vmem:[%s1906_s28 + $0x278] sm:$0xff] %v1518_v44  ;;  %v1521_v48 = vsel %vm451_vm2, 1.0, %v1833_v7  ;;  %v263_v49 = vld [vmem:[%s1886_s27 + $0x2c0] sm:$0xff]  ;;  %v264_v50 = vld [vmem:[%s1886_s27 + $0x2c8] sm:$0xff]  ;;  %v1522_v52 = vsel %vm452_vm3, 1.0, %v1833_v7  ;;  %vm454_vm5 = vcmp.lt.f32.partialorder %v260_v42, %v1888_v0  ;;  %vm455_vm6 = vcmp.lt.f32.partialorder %v261_v43, %v1888_v0 }
  0x42   : > { %v265_v51 = vld [vmem:[%s1886_s27 + $0x2d0] sm:$0xff]  ;;  %1025 = vst [vmem:[%s1906_s28 + $0x280] sm:$0xff] %v1519_v46  ;;  %1026 = vst [vmem:[%s1906_s28 + $0x288] sm:$0xff] %v1520_v47  ;;  %v266_v53 = vld [vmem:[%s1886_s27 + $0x2d8] sm:$0xff]  ;;  %v1523_v54 = vsel %vm453_vm4, 1.0, %v1833_v7  ;;  %v1524_v55 = vsel %vm454_vm5, 1.0, %v1833_v7  ;;  %vm456_vm7 = vcmp.lt.f32.partialorder %v262_v45, %v1888_v0  ;;  %vm457_vm8 = vcmp.lt.f32.partialorder %v263_v49, %v1888_v0 }
  0x43   : > { %1027 = vst [vmem:[%s1906_s28 + $0x290] sm:$0xff] %v1521_v48  ;;  %1028 = vst [vmem:[%s1906_s28 + $0x298] sm:$0xff] %v1522_v52  ;;  %v1525_v56 = vsel %vm455_vm6, 1.0, %v1833_v7  ;;  %v267_v57 = vld [vmem:[%s1886_s27 + $0x2e0] sm:$0xff]  ;;  %v268_v58 = vld [vmem:[%s1886_s27 + $0x2e8] sm:$0xff]  ;;  %v1526_v60 = vsel %vm456_vm7, 1.0, %v1833_v7  ;;  %vm458_vm9 = vcmp.lt.f32.partialorder %v264_v50, %v1888_v0  ;;  %vm459_vm10 = vcmp.lt.f32.partialorder %v265_v51, %v1888_v0 }
  0x44   : > { %v269_v59 = vld [vmem:[%s1886_s27 + $0x2f0] sm:$0xff]  ;;  %1029 = vst [vmem:[%s1906_s28 + $0x2a0] sm:$0xff] %v1523_v54  ;;  %1030 = vst [vmem:[%s1906_s28 + $0x2a8] sm:$0xff] %v1524_v55  ;;  %v270_v61 = vld [vmem:[%s1886_s27 + $0x2f8] sm:$0xff]  ;;  %v1527_v62 = vsel %vm457_vm8, 1.0, %v1833_v7  ;;  %v1528_v63 = vsel %vm458_vm9, 1.0, %v1833_v7  ;;  %vm460_vm11 = vcmp.lt.f32.partialorder %v266_v53, %v1888_v0  ;;  %vm461_vm12 = vcmp.lt.f32.partialorder %v267_v57, %v1888_v0 }
  0x45   : > { %1031 = vst [vmem:[%s1906_s28 + $0x2b0] sm:$0xff] %v1525_v56  ;;  %1032 = vst [vmem:[%s1906_s28 + $0x2b8] sm:$0xff] %v1526_v60  ;;  %v1529_v1 = vsel %vm459_vm10, 1.0, %v1833_v7  ;;  %v271_v2 = vld [vmem:[%s1886_s27 + $0x300] sm:$0xff]  ;;  %v272_v3 = vld [vmem:[%s1886_s27 + $0x308] sm:$0xff]  ;;  %v1530_v5 = vsel %vm460_vm11, 1.0, %v1833_v7  ;;  %vm462_vm13 = vcmp.lt.f32.partialorder %v268_v58, %v1888_v0  ;;  %vm463_vm14 = vcmp.lt.f32.partialorder %v269_v59, %v1888_v0 }
  0x46   : > { %v273_v4 = vld [vmem:[%s1886_s27 + $0x310] sm:$0xff]  ;;  %1033 = vst [vmem:[%s1906_s28 + $0x2c0] sm:$0xff] %v1527_v62  ;;  %1034 = vst [vmem:[%s1906_s28 + $0x2c8] sm:$0xff] %v1528_v63  ;;  %v274_v6 = vld [vmem:[%s1886_s27 + $0x318] sm:$0xff]  ;;  %v1531_v8 = vsel %vm461_vm12, 1.0, %v1833_v7  ;;  %v1532_v9 = vsel %vm462_vm13, 1.0, %v1833_v7  ;;  %vm464_vm15 = vcmp.lt.f32.partialorder %v270_v61, %v1888_v0  ;;  %vm465_vm0 = vcmp.lt.f32.partialorder %v271_v2, %v1888_v0 }
  0x47   : > { %1035 = vst [vmem:[%s1906_s28 + $0x2d0] sm:$0xff] %v1529_v1  ;;  %1036 = vst [vmem:[%s1906_s28 + $0x2d8] sm:$0xff] %v1530_v5  ;;  %v1533_v10 = vsel %vm463_vm14, 1.0, %v1833_v7  ;;  %v275_v11 = vld [vmem:[%s1886_s27 + $0x320] sm:$0xff]  ;;  %v276_v12 = vld [vmem:[%s1886_s27 + $0x328] sm:$0xff]  ;;  %v1534_v14 = vsel %vm464_vm15, 1.0, %v1833_v7  ;;  %vm466_vm1 = vcmp.lt.f32.partialorder %v272_v3, %v1888_v0  ;;  %vm467_vm2 = vcmp.lt.f32.partialorder %v273_v4, %v1888_v0 }
  0x48   : > { %v277_v13 = vld [vmem:[%s1886_s27 + $0x330] sm:$0xff]  ;;  %1037 = vst [vmem:[%s1906_s28 + $0x2e0] sm:$0xff] %v1531_v8  ;;  %1038 = vst [vmem:[%s1906_s28 + $0x2e8] sm:$0xff] %v1532_v9  ;;  %v278_v15 = vld [vmem:[%s1886_s27 + $0x338] sm:$0xff]  ;;  %v1535_v16 = vsel %vm465_vm0, 1.0, %v1833_v7  ;;  %v1536_v17 = vsel %vm466_vm1, 1.0, %v1833_v7  ;;  %vm468_vm3 = vcmp.lt.f32.partialorder %v274_v6, %v1888_v0  ;;  %vm469_vm4 = vcmp.lt.f32.partialorder %v275_v11, %v1888_v0 }
  0x49   : > { %1039 = vst [vmem:[%s1906_s28 + $0x2f0] sm:$0xff] %v1533_v10  ;;  %1040 = vst [vmem:[%s1906_s28 + $0x2f8] sm:$0xff] %v1534_v14  ;;  %v1537_v18 = vsel %vm467_vm2, 1.0, %v1833_v7  ;;  %v279_v19 = vld [vmem:[%s1886_s27 + $0x340] sm:$0xff]  ;;  %v280_v20 = vld [vmem:[%s1886_s27 + $0x348] sm:$0xff]  ;;  %v1538_v22 = vsel %vm468_vm3, 1.0, %v1833_v7  ;;  %vm470_vm5 = vcmp.lt.f32.partialorder %v276_v12, %v1888_v0  ;;  %vm471_vm6 = vcmp.lt.f32.partialorder %v277_v13, %v1888_v0 }
  0x4a   : > { %v281_v21 = vld [vmem:[%s1886_s27 + $0x350] sm:$0xff]  ;;  %1041 = vst [vmem:[%s1906_s28 + $0x300] sm:$0xff] %v1535_v16  ;;  %1042 = vst [vmem:[%s1906_s28 + $0x308] sm:$0xff] %v1536_v17  ;;  %v282_v23 = vld [vmem:[%s1886_s27 + $0x358] sm:$0xff]  ;;  %v1539_v24 = vsel %vm469_vm4, 1.0, %v1833_v7  ;;  %v1540_v25 = vsel %vm470_vm5, 1.0, %v1833_v7  ;;  %vm472_vm7 = vcmp.lt.f32.partialorder %v278_v15, %v1888_v0  ;;  %vm473_vm8 = vcmp.lt.f32.partialorder %v279_v19, %v1888_v0 }
  0x4b   : > { %1043 = vst [vmem:[%s1906_s28 + $0x310] sm:$0xff] %v1537_v18  ;;  %1044 = vst [vmem:[%s1906_s28 + $0x318] sm:$0xff] %v1538_v22  ;;  %v1541_v26 = vsel %vm471_vm6, 1.0, %v1833_v7  ;;  %v283_v27 = vld [vmem:[%s1886_s27 + $0x360] sm:$0xff]  ;;  %v284_v28 = vld [vmem:[%s1886_s27 + $0x368] sm:$0xff]  ;;  %v1542_v30 = vsel %vm472_vm7, 1.0, %v1833_v7  ;;  %vm474_vm9 = vcmp.lt.f32.partialorder %v280_v20, %v1888_v0  ;;  %vm475_vm10 = vcmp.lt.f32.partialorder %v281_v21, %v1888_v0 }
  0x4c   : > { %v285_v29 = vld [vmem:[%s1886_s27 + $0x370] sm:$0xff]  ;;  %1045 = vst [vmem:[%s1906_s28 + $0x320] sm:$0xff] %v1539_v24  ;;  %1046 = vst [vmem:[%s1906_s28 + $0x328] sm:$0xff] %v1540_v25  ;;  %v286_v31 = vld [vmem:[%s1886_s27 + $0x378] sm:$0xff]  ;;  %v1543_v32 = vsel %vm473_vm8, 1.0, %v1833_v7  ;;  %v1544_v33 = vsel %vm474_vm9, 1.0, %v1833_v7  ;;  %vm476_vm11 = vcmp.lt.f32.partialorder %v282_v23, %v1888_v0  ;;  %vm477_vm12 = vcmp.lt.f32.partialorder %v283_v27, %v1888_v0 }
  0x4d   : > { %1047 = vst [vmem:[%s1906_s28 + $0x330] sm:$0xff] %v1541_v26  ;;  %1048 = vst [vmem:[%s1906_s28 + $0x338] sm:$0xff] %v1542_v30  ;;  %v1545_v34 = vsel %vm475_vm10, 1.0, %v1833_v7  ;;  %v287_v35 = vld [vmem:[%s1886_s27 + $0x380] sm:$0xff]  ;;  %v288_v36 = vld [vmem:[%s1886_s27 + $0x388] sm:$0xff]  ;;  %v1546_v38 = vsel %vm476_vm11, 1.0, %v1833_v7  ;;  %vm478_vm13 = vcmp.lt.f32.partialorder %v284_v28, %v1888_v0  ;;  %vm479_vm14 = vcmp.lt.f32.partialorder %v285_v29, %v1888_v0 }
  0x4e   : > { %v289_v37 = vld [vmem:[%s1886_s27 + $0x390] sm:$0xff]  ;;  %1049 = vst [vmem:[%s1906_s28 + $0x340] sm:$0xff] %v1543_v32  ;;  %1050 = vst [vmem:[%s1906_s28 + $0x348] sm:$0xff] %v1544_v33  ;;  %v290_v39 = vld [vmem:[%s1886_s27 + $0x398] sm:$0xff]  ;;  %v1547_v40 = vsel %vm477_vm12, 1.0, %v1833_v7  ;;  %v1548_v41 = vsel %vm478_vm13, 1.0, %v1833_v7  ;;  %vm480_vm15 = vcmp.lt.f32.partialorder %v286_v31, %v1888_v0  ;;  %vm481_vm0 = vcmp.lt.f32.partialorder %v287_v35, %v1888_v0 }
  0x4f   : > { %1051 = vst [vmem:[%s1906_s28 + $0x350] sm:$0xff] %v1545_v34  ;;  %1052 = vst [vmem:[%s1906_s28 + $0x358] sm:$0xff] %v1546_v38  ;;  %v1549_v42 = vsel %vm479_vm14, 1.0, %v1833_v7  ;;  %v291_v43 = vld [vmem:[%s1886_s27 + $0x3a0] sm:$0xff]  ;;  %v292_v44 = vld [vmem:[%s1886_s27 + $0x3a8] sm:$0xff]  ;;  %v1550_v46 = vsel %vm480_vm15, 1.0, %v1833_v7  ;;  %vm482_vm1 = vcmp.lt.f32.partialorder %v288_v36, %v1888_v0  ;;  %vm483_vm2 = vcmp.lt.f32.partialorder %v289_v37, %v1888_v0 }
  0x50   : > { %v293_v45 = vld [vmem:[%s1886_s27 + $0x3b0] sm:$0xff]  ;;  %1053 = vst [vmem:[%s1906_s28 + $0x360] sm:$0xff] %v1547_v40  ;;  %1054 = vst [vmem:[%s1906_s28 + $0x368] sm:$0xff] %v1548_v41  ;;  %v294_v47 = vld [vmem:[%s1886_s27 + $0x3b8] sm:$0xff]  ;;  %v1551_v48 = vsel %vm481_vm0, 1.0, %v1833_v7  ;;  %v1552_v49 = vsel %vm482_vm1, 1.0, %v1833_v7  ;;  %vm484_vm3 = vcmp.lt.f32.partialorder %v290_v39, %v1888_v0  ;;  %vm485_vm4 = vcmp.lt.f32.partialorder %v291_v43, %v1888_v0 }
  0x51   : > { %1055 = vst [vmem:[%s1906_s28 + $0x370] sm:$0xff] %v1549_v42  ;;  %1056 = vst [vmem:[%s1906_s28 + $0x378] sm:$0xff] %v1550_v46  ;;  %v1553_v50 = vsel %vm483_vm2, 1.0, %v1833_v7  ;;  %v295_v51 = vld [vmem:[%s1886_s27 + $0x3c0] sm:$0xff]  ;;  %v296_v52 = vld [vmem:[%s1886_s27 + $0x3c8] sm:$0xff]  ;;  %v1554_v54 = vsel %vm484_vm3, 1.0, %v1833_v7  ;;  %vm486_vm5 = vcmp.lt.f32.partialorder %v292_v44, %v1888_v0  ;;  %vm487_vm6 = vcmp.lt.f32.partialorder %v293_v45, %v1888_v0 }
  0x52   : > { %v297_v53 = vld [vmem:[%s1886_s27 + $0x3d0] sm:$0xff]  ;;  %1057 = vst [vmem:[%s1906_s28 + $0x380] sm:$0xff] %v1551_v48  ;;  %1058 = vst [vmem:[%s1906_s28 + $0x388] sm:$0xff] %v1552_v49  ;;  %v298_v55 = vld [vmem:[%s1886_s27 + $0x3d8] sm:$0xff]  ;;  %v1555_v56 = vsel %vm485_vm4, 1.0, %v1833_v7  ;;  %v1556_v57 = vsel %vm486_vm5, 1.0, %v1833_v7  ;;  %vm488_vm7 = vcmp.lt.f32.partialorder %v294_v47, %v1888_v0  ;;  %vm489_vm8 = vcmp.lt.f32.partialorder %v295_v51, %v1888_v0 }
  0x53   : > { %1059 = vst [vmem:[%s1906_s28 + $0x390] sm:$0xff] %v1553_v50  ;;  %1060 = vst [vmem:[%s1906_s28 + $0x398] sm:$0xff] %v1554_v54  ;;  %v1557_v58 = vsel %vm487_vm6, 1.0, %v1833_v7  ;;  %v299_v59 = vld [vmem:[%s1886_s27 + $0x3e0] sm:$0xff]  ;;  %v300_v60 = vld [vmem:[%s1886_s27 + $0x3e8] sm:$0xff]  ;;  %v1558_v62 = vsel %vm488_vm7, 1.0, %v1833_v7  ;;  %vm490_vm9 = vcmp.lt.f32.partialorder %v296_v52, %v1888_v0  ;;  %vm491_vm10 = vcmp.lt.f32.partialorder %v297_v53, %v1888_v0 }
  0x54   : > { %v301_v61 = vld [vmem:[%s1886_s27 + $0x3f0] sm:$0xff]  ;;  %1061 = vst [vmem:[%s1906_s28 + $0x3a0] sm:$0xff] %v1555_v56  ;;  %1062 = vst [vmem:[%s1906_s28 + $0x3a8] sm:$0xff] %v1556_v57  ;;  %v302_v63 = vld [vmem:[%s1886_s27 + $0x3f8] sm:$0xff]  ;;  %v1559_v1 = vsel %vm489_vm8, 1.0, %v1833_v7  ;;  %v1560_v2 = vsel %vm490_vm9, 1.0, %v1833_v7  ;;  %vm492_vm11 = vcmp.lt.f32.partialorder %v298_v55, %v1888_v0  ;;  %vm493_vm12 = vcmp.lt.f32.partialorder %v299_v59, %v1888_v0 }
  0x55   : > { %1063 = vst [vmem:[%s1906_s28 + $0x3b0] sm:$0xff] %v1557_v58  ;;  %1064 = vst [vmem:[%s1906_s28 + $0x3b8] sm:$0xff] %v1558_v62  ;;  %v1561_v3 = vsel %vm491_vm10, 1.0, %v1833_v7  ;;  %v303_v4 = vld [vmem:[%s1886_s27 + $0x400] sm:$0xff]  ;;  %v304_v5 = vld [vmem:[%s1886_s27 + $0x408] sm:$0xff]  ;;  %v1562_v8 = vsel %vm492_vm11, 1.0, %v1833_v7  ;;  %vm494_vm13 = vcmp.lt.f32.partialorder %v300_v60, %v1888_v0  ;;  %vm495_vm14 = vcmp.lt.f32.partialorder %v301_v61, %v1888_v0 }
  0x56   : > { %v305_v6 = vld [vmem:[%s1886_s27 + $0x410] sm:$0xff]  ;;  %1065 = vst [vmem:[%s1906_s28 + $0x3c0] sm:$0xff] %v1559_v1  ;;  %1066 = vst [vmem:[%s1906_s28 + $0x3c8] sm:$0xff] %v1560_v2  ;;  %v306_v9 = vld [vmem:[%s1886_s27 + $0x418] sm:$0xff]  ;;  %v1563_v10 = vsel %vm493_vm12, 1.0, %v1833_v7  ;;  %v1564_v11 = vsel %vm494_vm13, 1.0, %v1833_v7  ;;  %vm496_vm15 = vcmp.lt.f32.partialorder %v302_v63, %v1888_v0  ;;  %vm497_vm0 = vcmp.lt.f32.partialorder %v303_v4, %v1888_v0 }
  0x57   : > { %1067 = vst [vmem:[%s1906_s28 + $0x3d0] sm:$0xff] %v1561_v3  ;;  %1068 = vst [vmem:[%s1906_s28 + $0x3d8] sm:$0xff] %v1562_v8  ;;  %v1565_v12 = vsel %vm495_vm14, 1.0, %v1833_v7  ;;  %v307_v13 = vld [vmem:[%s1886_s27 + $0x420] sm:$0xff]  ;;  %v308_v14 = vld [vmem:[%s1886_s27 + $0x428] sm:$0xff]  ;;  %v1566_v16 = vsel %vm496_vm15, 1.0, %v1833_v7  ;;  %vm498_vm1 = vcmp.lt.f32.partialorder %v304_v5, %v1888_v0  ;;  %vm499_vm2 = vcmp.lt.f32.partialorder %v305_v6, %v1888_v0 }
  0x58   : > { %v309_v15 = vld [vmem:[%s1886_s27 + $0x430] sm:$0xff]  ;;  %1069 = vst [vmem:[%s1906_s28 + $0x3e0] sm:$0xff] %v1563_v10  ;;  %1070 = vst [vmem:[%s1906_s28 + $0x3e8] sm:$0xff] %v1564_v11  ;;  %v310_v17 = vld [vmem:[%s1886_s27 + $0x438] sm:$0xff]  ;;  %v1567_v18 = vsel %vm497_vm0, 1.0, %v1833_v7  ;;  %v1568_v19 = vsel %vm498_vm1, 1.0, %v1833_v7  ;;  %vm500_vm3 = vcmp.lt.f32.partialorder %v306_v9, %v1888_v0  ;;  %vm501_vm4 = vcmp.lt.f32.partialorder %v307_v13, %v1888_v0 }
  0x59   : > { %1071 = vst [vmem:[%s1906_s28 + $0x3f0] sm:$0xff] %v1565_v12  ;;  %1072 = vst [vmem:[%s1906_s28 + $0x3f8] sm:$0xff] %v1566_v16  ;;  %v1569_v20 = vsel %vm499_vm2, 1.0, %v1833_v7  ;;  %v311_v21 = vld [vmem:[%s1886_s27 + $0x440] sm:$0xff]  ;;  %v312_v22 = vld [vmem:[%s1886_s27 + $0x448] sm:$0xff]  ;;  %v1570_v24 = vsel %vm500_vm3, 1.0, %v1833_v7  ;;  %vm502_vm5 = vcmp.lt.f32.partialorder %v308_v14, %v1888_v0  ;;  %vm503_vm6 = vcmp.lt.f32.partialorder %v309_v15, %v1888_v0 }
  0x5a   : > { %v313_v23 = vld [vmem:[%s1886_s27 + $0x450] sm:$0xff]  ;;  %1073 = vst [vmem:[%s1906_s28 + $0x400] sm:$0xff] %v1567_v18  ;;  %1074 = vst [vmem:[%s1906_s28 + $0x408] sm:$0xff] %v1568_v19  ;;  %v314_v25 = vld [vmem:[%s1886_s27 + $0x458] sm:$0xff]  ;;  %v1571_v26 = vsel %vm501_vm4, 1.0, %v1833_v7  ;;  %v1572_v27 = vsel %vm502_vm5, 1.0, %v1833_v7  ;;  %vm504_vm7 = vcmp.lt.f32.partialorder %v310_v17, %v1888_v0  ;;  %vm505_vm8 = vcmp.lt.f32.partialorder %v311_v21, %v1888_v0 }
  0x5b   : > { %1075 = vst [vmem:[%s1906_s28 + $0x410] sm:$0xff] %v1569_v20  ;;  %1076 = vst [vmem:[%s1906_s28 + $0x418] sm:$0xff] %v1570_v24  ;;  %v1573_v28 = vsel %vm503_vm6, 1.0, %v1833_v7  ;;  %v315_v29 = vld [vmem:[%s1886_s27 + $0x460] sm:$0xff]  ;;  %v316_v30 = vld [vmem:[%s1886_s27 + $0x468] sm:$0xff]  ;;  %v1574_v32 = vsel %vm504_vm7, 1.0, %v1833_v7  ;;  %vm506_vm9 = vcmp.lt.f32.partialorder %v312_v22, %v1888_v0  ;;  %vm507_vm10 = vcmp.lt.f32.partialorder %v313_v23, %v1888_v0 }
  0x5c   : > { %v317_v31 = vld [vmem:[%s1886_s27 + $0x470] sm:$0xff]  ;;  %1077 = vst [vmem:[%s1906_s28 + $0x420] sm:$0xff] %v1571_v26  ;;  %1078 = vst [vmem:[%s1906_s28 + $0x428] sm:$0xff] %v1572_v27  ;;  %v318_v33 = vld [vmem:[%s1886_s27 + $0x478] sm:$0xff]  ;;  %v1575_v34 = vsel %vm505_vm8, 1.0, %v1833_v7  ;;  %v1576_v35 = vsel %vm506_vm9, 1.0, %v1833_v7  ;;  %vm508_vm11 = vcmp.lt.f32.partialorder %v314_v25, %v1888_v0  ;;  %vm509_vm12 = vcmp.lt.f32.partialorder %v315_v29, %v1888_v0 }
  0x5d   : > { %1079 = vst [vmem:[%s1906_s28 + $0x430] sm:$0xff] %v1573_v28  ;;  %1080 = vst [vmem:[%s1906_s28 + $0x438] sm:$0xff] %v1574_v32  ;;  %v1577_v36 = vsel %vm507_vm10, 1.0, %v1833_v7  ;;  %v319_v37 = vld [vmem:[%s1886_s27 + $0x480] sm:$0xff]  ;;  %v320_v38 = vld [vmem:[%s1886_s27 + $0x488] sm:$0xff]  ;;  %v1578_v40 = vsel %vm508_vm11, 1.0, %v1833_v7  ;;  %vm510_vm13 = vcmp.lt.f32.partialorder %v316_v30, %v1888_v0  ;;  %vm511_vm14 = vcmp.lt.f32.partialorder %v317_v31, %v1888_v0 }
  0x5e   : > { %v321_v39 = vld [vmem:[%s1886_s27 + $0x490] sm:$0xff]  ;;  %1081 = vst [vmem:[%s1906_s28 + $0x440] sm:$0xff] %v1575_v34  ;;  %1082 = vst [vmem:[%s1906_s28 + $0x448] sm:$0xff] %v1576_v35  ;;  %v322_v41 = vld [vmem:[%s1886_s27 + $0x498] sm:$0xff]  ;;  %v1579_v42 = vsel %vm509_vm12, 1.0, %v1833_v7  ;;  %v1580_v43 = vsel %vm510_vm13, 1.0, %v1833_v7  ;;  %vm512_vm15 = vcmp.lt.f32.partialorder %v318_v33, %v1888_v0  ;;  %vm513_vm0 = vcmp.lt.f32.partialorder %v319_v37, %v1888_v0 }
  0x5f   : > { %1083 = vst [vmem:[%s1906_s28 + $0x450] sm:$0xff] %v1577_v36  ;;  %1084 = vst [vmem:[%s1906_s28 + $0x458] sm:$0xff] %v1578_v40  ;;  %v1581_v44 = vsel %vm511_vm14, 1.0, %v1833_v7  ;;  %v323_v45 = vld [vmem:[%s1886_s27 + $0x4a0] sm:$0xff]  ;;  %v324_v46 = vld [vmem:[%s1886_s27 + $0x4a8] sm:$0xff]  ;;  %v1582_v48 = vsel %vm512_vm15, 1.0, %v1833_v7  ;;  %vm514_vm1 = vcmp.lt.f32.partialorder %v320_v38, %v1888_v0  ;;  %vm515_vm2 = vcmp.lt.f32.partialorder %v321_v39, %v1888_v0 }
  0x60   : > { %v325_v47 = vld [vmem:[%s1886_s27 + $0x4b0] sm:$0xff]  ;;  %1085 = vst [vmem:[%s1906_s28 + $0x460] sm:$0xff] %v1579_v42  ;;  %1086 = vst [vmem:[%s1906_s28 + $0x468] sm:$0xff] %v1580_v43  ;;  %v326_v49 = vld [vmem:[%s1886_s27 + $0x4b8] sm:$0xff]  ;;  %v1583_v50 = vsel %vm513_vm0, 1.0, %v1833_v7  ;;  %v1584_v51 = vsel %vm514_vm1, 1.0, %v1833_v7  ;;  %vm516_vm3 = vcmp.lt.f32.partialorder %v322_v41, %v1888_v0  ;;  %vm517_vm4 = vcmp.lt.f32.partialorder %v323_v45, %v1888_v0 }
  0x61   : > { %1087 = vst [vmem:[%s1906_s28 + $0x470] sm:$0xff] %v1581_v44  ;;  %1088 = vst [vmem:[%s1906_s28 + $0x478] sm:$0xff] %v1582_v48  ;;  %v1585_v52 = vsel %vm515_vm2, 1.0, %v1833_v7  ;;  %v327_v53 = vld [vmem:[%s1886_s27 + $0x4c0] sm:$0xff]  ;;  %v328_v54 = vld [vmem:[%s1886_s27 + $0x4c8] sm:$0xff]  ;;  %v1586_v56 = vsel %vm516_vm3, 1.0, %v1833_v7  ;;  %vm518_vm5 = vcmp.lt.f32.partialorder %v324_v46, %v1888_v0  ;;  %vm519_vm6 = vcmp.lt.f32.partialorder %v325_v47, %v1888_v0 }
  0x62   : > { %v329_v55 = vld [vmem:[%s1886_s27 + $0x4d0] sm:$0xff]  ;;  %1089 = vst [vmem:[%s1906_s28 + $0x480] sm:$0xff] %v1583_v50  ;;  %1090 = vst [vmem:[%s1906_s28 + $0x488] sm:$0xff] %v1584_v51  ;;  %v330_v57 = vld [vmem:[%s1886_s27 + $0x4d8] sm:$0xff]  ;;  %v1587_v58 = vsel %vm517_vm4, 1.0, %v1833_v7  ;;  %v1588_v59 = vsel %vm518_vm5, 1.0, %v1833_v7  ;;  %vm520_vm7 = vcmp.lt.f32.partialorder %v326_v49, %v1888_v0  ;;  %vm521_vm8 = vcmp.lt.f32.partialorder %v327_v53, %v1888_v0 }
  0x63   : > { %1091 = vst [vmem:[%s1906_s28 + $0x490] sm:$0xff] %v1585_v52  ;;  %1092 = vst [vmem:[%s1906_s28 + $0x498] sm:$0xff] %v1586_v56  ;;  %v1589_v60 = vsel %vm519_vm6, 1.0, %v1833_v7  ;;  %v331_v61 = vld [vmem:[%s1886_s27 + $0x4e0] sm:$0xff]  ;;  %v332_v62 = vld [vmem:[%s1886_s27 + $0x4e8] sm:$0xff]  ;;  %v1590_v1 = vsel %vm520_vm7, 1.0, %v1833_v7  ;;  %vm522_vm9 = vcmp.lt.f32.partialorder %v328_v54, %v1888_v0  ;;  %vm523_vm10 = vcmp.lt.f32.partialorder %v329_v55, %v1888_v0 }
  0x64   : > { %v333_v63 = vld [vmem:[%s1886_s27 + $0x4f0] sm:$0xff]  ;;  %1093 = vst [vmem:[%s1906_s28 + $0x4a0] sm:$0xff] %v1587_v58  ;;  %1094 = vst [vmem:[%s1906_s28 + $0x4a8] sm:$0xff] %v1588_v59  ;;  %v334_v2 = vld [vmem:[%s1886_s27 + $0x4f8] sm:$0xff]  ;;  %v1591_v3 = vsel %vm521_vm8, 1.0, %v1833_v7  ;;  %v1592_v4 = vsel %vm522_vm9, 1.0, %v1833_v7  ;;  %vm524_vm11 = vcmp.lt.f32.partialorder %v330_v57, %v1888_v0  ;;  %vm525_vm12 = vcmp.lt.f32.partialorder %v331_v61, %v1888_v0 }
  0x65   : > { %1095 = vst [vmem:[%s1906_s28 + $0x4b0] sm:$0xff] %v1589_v60  ;;  %1096 = vst [vmem:[%s1906_s28 + $0x4b8] sm:$0xff] %v1590_v1  ;;  %v1593_v5 = vsel %vm523_vm10, 1.0, %v1833_v7  ;;  %v335_v6 = vld [vmem:[%s1886_s27 + $0x500] sm:$0xff]  ;;  %v336_v8 = vld [vmem:[%s1886_s27 + $0x508] sm:$0xff]  ;;  %v1594_v10 = vsel %vm524_vm11, 1.0, %v1833_v7  ;;  %vm526_vm13 = vcmp.lt.f32.partialorder %v332_v62, %v1888_v0  ;;  %vm527_vm14 = vcmp.lt.f32.partialorder %v333_v63, %v1888_v0 }
  0x66   : > { %v337_v9 = vld [vmem:[%s1886_s27 + $0x510] sm:$0xff]  ;;  %1097 = vst [vmem:[%s1906_s28 + $0x4c0] sm:$0xff] %v1591_v3  ;;  %1098 = vst [vmem:[%s1906_s28 + $0x4c8] sm:$0xff] %v1592_v4  ;;  %v338_v11 = vld [vmem:[%s1886_s27 + $0x518] sm:$0xff]  ;;  %v1595_v12 = vsel %vm525_vm12, 1.0, %v1833_v7  ;;  %v1596_v13 = vsel %vm526_vm13, 1.0, %v1833_v7  ;;  %vm528_vm15 = vcmp.lt.f32.partialorder %v334_v2, %v1888_v0  ;;  %vm529_vm0 = vcmp.lt.f32.partialorder %v335_v6, %v1888_v0 }
  0x67   : > { %1099 = vst [vmem:[%s1906_s28 + $0x4d0] sm:$0xff] %v1593_v5  ;;  %1100 = vst [vmem:[%s1906_s28 + $0x4d8] sm:$0xff] %v1594_v10  ;;  %v1597_v14 = vsel %vm527_vm14, 1.0, %v1833_v7  ;;  %v339_v15 = vld [vmem:[%s1886_s27 + $0x520] sm:$0xff]  ;;  %v340_v16 = vld [vmem:[%s1886_s27 + $0x528] sm:$0xff]  ;;  %v1598_v18 = vsel %vm528_vm15, 1.0, %v1833_v7  ;;  %vm530_vm1 = vcmp.lt.f32.partialorder %v336_v8, %v1888_v0  ;;  %vm531_vm2 = vcmp.lt.f32.partialorder %v337_v9, %v1888_v0 }
  0x68   : > { %v341_v17 = vld [vmem:[%s1886_s27 + $0x530] sm:$0xff]  ;;  %1101 = vst [vmem:[%s1906_s28 + $0x4e0] sm:$0xff] %v1595_v12  ;;  %1102 = vst [vmem:[%s1906_s28 + $0x4e8] sm:$0xff] %v1596_v13  ;;  %v342_v19 = vld [vmem:[%s1886_s27 + $0x538] sm:$0xff]  ;;  %v1599_v20 = vsel %vm529_vm0, 1.0, %v1833_v7  ;;  %v1600_v21 = vsel %vm530_vm1, 1.0, %v1833_v7  ;;  %vm532_vm3 = vcmp.lt.f32.partialorder %v338_v11, %v1888_v0  ;;  %vm533_vm4 = vcmp.lt.f32.partialorder %v339_v15, %v1888_v0 }
  0x69   : > { %1103 = vst [vmem:[%s1906_s28 + $0x4f0] sm:$0xff] %v1597_v14  ;;  %1104 = vst [vmem:[%s1906_s28 + $0x4f8] sm:$0xff] %v1598_v18  ;;  %v1601_v22 = vsel %vm531_vm2, 1.0, %v1833_v7  ;;  %v343_v23 = vld [vmem:[%s1886_s27 + $0x540] sm:$0xff]  ;;  %v344_v24 = vld [vmem:[%s1886_s27 + $0x548] sm:$0xff]  ;;  %v1602_v26 = vsel %vm532_vm3, 1.0, %v1833_v7  ;;  %vm534_vm5 = vcmp.lt.f32.partialorder %v340_v16, %v1888_v0  ;;  %vm535_vm6 = vcmp.lt.f32.partialorder %v341_v17, %v1888_v0 }
  0x6a   : > { %v345_v25 = vld [vmem:[%s1886_s27 + $0x550] sm:$0xff]  ;;  %1105 = vst [vmem:[%s1906_s28 + $0x500] sm:$0xff] %v1599_v20  ;;  %1106 = vst [vmem:[%s1906_s28 + $0x508] sm:$0xff] %v1600_v21  ;;  %v346_v27 = vld [vmem:[%s1886_s27 + $0x558] sm:$0xff]  ;;  %v1603_v28 = vsel %vm533_vm4, 1.0, %v1833_v7  ;;  %v1604_v29 = vsel %vm534_vm5, 1.0, %v1833_v7  ;;  %vm536_vm7 = vcmp.lt.f32.partialorder %v342_v19, %v1888_v0  ;;  %vm537_vm8 = vcmp.lt.f32.partialorder %v343_v23, %v1888_v0 }
  0x6b   : > { %1107 = vst [vmem:[%s1906_s28 + $0x510] sm:$0xff] %v1601_v22  ;;  %1108 = vst [vmem:[%s1906_s28 + $0x518] sm:$0xff] %v1602_v26  ;;  %v1605_v30 = vsel %vm535_vm6, 1.0, %v1833_v7  ;;  %v347_v31 = vld [vmem:[%s1886_s27 + $0x560] sm:$0xff]  ;;  %v348_v32 = vld [vmem:[%s1886_s27 + $0x568] sm:$0xff]  ;;  %v1606_v34 = vsel %vm536_vm7, 1.0, %v1833_v7  ;;  %vm538_vm9 = vcmp.lt.f32.partialorder %v344_v24, %v1888_v0  ;;  %vm539_vm10 = vcmp.lt.f32.partialorder %v345_v25, %v1888_v0 }
  0x6c   : > { %v349_v33 = vld [vmem:[%s1886_s27 + $0x570] sm:$0xff]  ;;  %1109 = vst [vmem:[%s1906_s28 + $0x520] sm:$0xff] %v1603_v28  ;;  %1110 = vst [vmem:[%s1906_s28 + $0x528] sm:$0xff] %v1604_v29  ;;  %v350_v35 = vld [vmem:[%s1886_s27 + $0x578] sm:$0xff]  ;;  %v1607_v36 = vsel %vm537_vm8, 1.0, %v1833_v7  ;;  %v1608_v37 = vsel %vm538_vm9, 1.0, %v1833_v7  ;;  %vm540_vm11 = vcmp.lt.f32.partialorder %v346_v27, %v1888_v0  ;;  %vm541_vm12 = vcmp.lt.f32.partialorder %v347_v31, %v1888_v0 }
  0x6d   : > { %1111 = vst [vmem:[%s1906_s28 + $0x530] sm:$0xff] %v1605_v30  ;;  %1112 = vst [vmem:[%s1906_s28 + $0x538] sm:$0xff] %v1606_v34  ;;  %v1609_v38 = vsel %vm539_vm10, 1.0, %v1833_v7  ;;  %v351_v39 = vld [vmem:[%s1886_s27 + $0x580] sm:$0xff]  ;;  %v352_v40 = vld [vmem:[%s1886_s27 + $0x588] sm:$0xff]  ;;  %v1610_v42 = vsel %vm540_vm11, 1.0, %v1833_v7  ;;  %vm542_vm13 = vcmp.lt.f32.partialorder %v348_v32, %v1888_v0  ;;  %vm543_vm14 = vcmp.lt.f32.partialorder %v349_v33, %v1888_v0 }
  0x6e   : > { %v353_v41 = vld [vmem:[%s1886_s27 + $0x590] sm:$0xff]  ;;  %1113 = vst [vmem:[%s1906_s28 + $0x540] sm:$0xff] %v1607_v36  ;;  %1114 = vst [vmem:[%s1906_s28 + $0x548] sm:$0xff] %v1608_v37  ;;  %v354_v43 = vld [vmem:[%s1886_s27 + $0x598] sm:$0xff]  ;;  %v1611_v44 = vsel %vm541_vm12, 1.0, %v1833_v7  ;;  %v1612_v45 = vsel %vm542_vm13, 1.0, %v1833_v7  ;;  %vm544_vm15 = vcmp.lt.f32.partialorder %v350_v35, %v1888_v0  ;;  %vm545_vm0 = vcmp.lt.f32.partialorder %v351_v39, %v1888_v0 }
  0x6f   : > { %1115 = vst [vmem:[%s1906_s28 + $0x550] sm:$0xff] %v1609_v38  ;;  %1116 = vst [vmem:[%s1906_s28 + $0x558] sm:$0xff] %v1610_v42  ;;  %v1613_v46 = vsel %vm543_vm14, 1.0, %v1833_v7  ;;  %v355_v47 = vld [vmem:[%s1886_s27 + $0x5a0] sm:$0xff]  ;;  %v356_v48 = vld [vmem:[%s1886_s27 + $0x5a8] sm:$0xff]  ;;  %v1614_v50 = vsel %vm544_vm15, 1.0, %v1833_v7  ;;  %vm546_vm1 = vcmp.lt.f32.partialorder %v352_v40, %v1888_v0  ;;  %vm547_vm2 = vcmp.lt.f32.partialorder %v353_v41, %v1888_v0 }
  0x70   : > { %v357_v49 = vld [vmem:[%s1886_s27 + $0x5b0] sm:$0xff]  ;;  %1117 = vst [vmem:[%s1906_s28 + $0x560] sm:$0xff] %v1611_v44  ;;  %1118 = vst [vmem:[%s1906_s28 + $0x568] sm:$0xff] %v1612_v45  ;;  %v358_v51 = vld [vmem:[%s1886_s27 + $0x5b8] sm:$0xff]  ;;  %v1615_v52 = vsel %vm545_vm0, 1.0, %v1833_v7  ;;  %v1616_v53 = vsel %vm546_vm1, 1.0, %v1833_v7  ;;  %vm548_vm3 = vcmp.lt.f32.partialorder %v354_v43, %v1888_v0  ;;  %vm549_vm4 = vcmp.lt.f32.partialorder %v355_v47, %v1888_v0 }
  0x71   : > { %1119 = vst [vmem:[%s1906_s28 + $0x570] sm:$0xff] %v1613_v46  ;;  %1120 = vst [vmem:[%s1906_s28 + $0x578] sm:$0xff] %v1614_v50  ;;  %v1617_v54 = vsel %vm547_vm2, 1.0, %v1833_v7  ;;  %v359_v55 = vld [vmem:[%s1886_s27 + $0x5c0] sm:$0xff]  ;;  %v360_v56 = vld [vmem:[%s1886_s27 + $0x5c8] sm:$0xff]  ;;  %v1618_v58 = vsel %vm548_vm3, 1.0, %v1833_v7  ;;  %vm550_vm5 = vcmp.lt.f32.partialorder %v356_v48, %v1888_v0  ;;  %vm551_vm6 = vcmp.lt.f32.partialorder %v357_v49, %v1888_v0 }
  0x72   : > { %v361_v57 = vld [vmem:[%s1886_s27 + $0x5d0] sm:$0xff]  ;;  %1121 = vst [vmem:[%s1906_s28 + $0x580] sm:$0xff] %v1615_v52  ;;  %1122 = vst [vmem:[%s1906_s28 + $0x588] sm:$0xff] %v1616_v53  ;;  %v362_v59 = vld [vmem:[%s1886_s27 + $0x5d8] sm:$0xff]  ;;  %v1619_v60 = vsel %vm549_vm4, 1.0, %v1833_v7  ;;  %v1620_v61 = vsel %vm550_vm5, 1.0, %v1833_v7  ;;  %vm552_vm7 = vcmp.lt.f32.partialorder %v358_v51, %v1888_v0  ;;  %vm553_vm8 = vcmp.lt.f32.partialorder %v359_v55, %v1888_v0 }
  0x73   : > { %1123 = vst [vmem:[%s1906_s28 + $0x590] sm:$0xff] %v1617_v54  ;;  %1124 = vst [vmem:[%s1906_s28 + $0x598] sm:$0xff] %v1618_v58  ;;  %v1621_v62 = vsel %vm551_vm6, 1.0, %v1833_v7  ;;  %v363_v63 = vld [vmem:[%s1886_s27 + $0x5e0] sm:$0xff]  ;;  %v364_v1 = vld [vmem:[%s1886_s27 + $0x5e8] sm:$0xff]  ;;  %v1622_v3 = vsel %vm552_vm7, 1.0, %v1833_v7  ;;  %vm554_vm9 = vcmp.lt.f32.partialorder %v360_v56, %v1888_v0  ;;  %vm555_vm10 = vcmp.lt.f32.partialorder %v361_v57, %v1888_v0 }
  0x74   : > { %v365_v2 = vld [vmem:[%s1886_s27 + $0x5f0] sm:$0xff]  ;;  %1125 = vst [vmem:[%s1906_s28 + $0x5a0] sm:$0xff] %v1619_v60  ;;  %1126 = vst [vmem:[%s1906_s28 + $0x5a8] sm:$0xff] %v1620_v61  ;;  %v366_v4 = vld [vmem:[%s1886_s27 + $0x5f8] sm:$0xff]  ;;  %v1623_v5 = vsel %vm553_vm8, 1.0, %v1833_v7  ;;  %v1624_v6 = vsel %vm554_vm9, 1.0, %v1833_v7  ;;  %vm556_vm11 = vcmp.lt.f32.partialorder %v362_v59, %v1888_v0  ;;  %vm557_vm12 = vcmp.lt.f32.partialorder %v363_v63, %v1888_v0 }
  0x75   : > { %1127 = vst [vmem:[%s1906_s28 + $0x5b0] sm:$0xff] %v1621_v62  ;;  %1128 = vst [vmem:[%s1906_s28 + $0x5b8] sm:$0xff] %v1622_v3  ;;  %v1625_v8 = vsel %vm555_vm10, 1.0, %v1833_v7  ;;  %v1626_v9 = vsel %vm556_vm11, 1.0, %v1833_v7  ;;  %vm558_vm13 = vcmp.lt.f32.partialorder %v364_v1, %v1888_v0  ;;  %vm559_vm14 = vcmp.lt.f32.partialorder %v365_v2, %v1888_v0  ;;  %1143 = sbr.rel (!%p1874_p4) target bundleno = 186 (0xba), region = 32 }
  0x76   : > { %1129 = vst [vmem:[%s1906_s28 + $0x5c0] sm:$0xff] %v1623_v5  ;;  %1130 = vst [vmem:[%s1906_s28 + $0x5c8] sm:$0xff] %v1624_v6  ;;  %v1627_v10 = vsel %vm557_vm12, 1.0, %v1833_v7  ;;  %v1628_v11 = vsel %vm558_vm13, 1.0, %v1833_v7  ;;  %v1629_v12 = vsel %vm559_vm14, 1.0, %v1833_v7  ;;  %vm560_vm15 = vcmp.lt.f32.partialorder %v366_v4, %v1888_v0 }
  0x77   : > { %1131 = vst [vmem:[%s1906_s28 + $0x5d0] sm:$0xff] %v1625_v8  ;;  %1132 = vst [vmem:[%s1906_s28 + $0x5d8] sm:$0xff] %v1626_v9  ;;  %v1630_v13 = vsel %vm560_vm15, 1.0, %v1833_v7 }
  0x78   : > { %1133 = vst [vmem:[%s1906_s28 + $0x5e0] sm:$0xff] %v1627_v10  ;;  %1134 = vst [vmem:[%s1906_s28 + $0x5e8] sm:$0xff] %v1628_v11 }
  0x79   : > { %1135 = vst [vmem:[%s1906_s28 + $0x5f0] sm:$0xff] %v1629_v12  ;;  %1136 = vst [vmem:[%s1906_s28 + $0x5f8] sm:$0xff] %v1630_v13 }
  0x7a   : > { %s2910_s29 = smov (!%p1146_p8, %s1145_s29), 24 }
  0x7b   : > { %s1649_s6 = sshll.u32 %s2910_s29, 10 }
  0x7c   : > { %p1636_p9 = scmp.eq.s32.totalorder %s1649_s6, 0 }
  0x7d   : > { %s2673_s7 = sshrl.u32 (!%p1636_p9), %s2910_s29, 3 }
  0x7e   : > { %1156 = sbr.rel (%p1636_p9) target bundleno = 186 (0xba), region = 36  ;;  %p1637_p10 = scmp.le.s32.totalorder (!%p1636_p9), %s2673_s7, 0 }
  0x83   : > { %1389 = sbr.rel (%p1637_p10) target bundleno = 169 (0xa9), region = 84  ;;  %s2898_s8 = smov (!%p1637_p10), %s2667_s5 }
  0x84   : > { %s2899_s9 = smov (!%p1637_p10), %s1906_s28  ;;  %s2682_s10 = smov (!%p1637_p10), 0  }
  0x85   : > { %s2684_s11 = smov (!%p1637_p10), 0  }
  0x88 LB: >> { %v1169_v0 = vld [vmem:[%s1807_s9] sm:$0xff]  ;;  %s1297_s13 = sadd.s32 1, %s1811_s10  ;;  %v1185_v20 = vld [vmem:[%s1807_s9 + $0x8] sm:$0xff]  ;;  %v1201_v28 = vld [vmem:[%s1807_s9 + $0x10] sm:$0xff]  ;;  %s1163_s11 = sadd.s32 1, %s1815_s11   ;;  %s1815_s11 = sphi %s2684_s11, %s1163_s11   ;;  %s1811_s10 = sphi %s2682_s10, %s2902_s10   ;;  %s1807_s9 = sphi %s2899_s9, %s2901_s9   ;;  %s1803_s8 = sphi %s2898_s8, %s2900_s8  }
  0x89   : >> { %v1171_v7 = vld [vmem:[%s1807_s9 + $0x40] sm:$0xff]  ;;  %1170 = vst [vmem:[%s1803_s8] sm:$0xff] %v1169_v0  ;;  %p1298_p11 = scmp.ge.s32.totalorder %s1297_s13, %s2673_s7  ;;  %1186 = vst [vmem:[%s1803_s8 + $0x8] sm:$0xff] %v1185_v20  ;;  %v1187_v21 = vld [vmem:[%s1807_s9 + $0x48] sm:$0xff]  ;;  %p1162_p12 = scmp.ge.s32.totalorder %s1163_s11, %s2673_s7 }
  0x8a   : >> { %v1173_v14 = vld [vmem:[%s1807_s9 + $0x80] sm:$0xff]  ;;  %1172 = vst [vmem:[%s1803_s8 + $0x40] sm:$0xff] %v1171_v7  ;;  %v1189_v22 = vld [vmem:[%s1807_s9 + $0x88] sm:$0xff]  ;;  %1188 = vst [vmem:[%s1803_s8 + $0x48] sm:$0xff] %v1187_v21 }
  0x8b   : >> { %1174 = vst [vmem:[%s1803_s8 + $0x80] sm:$0xff] %v1173_v14  ;;  %v1175_v15 = vld [vmem:[%s1807_s9 + $0xc0] sm:$0xff]  ;;  %v1191_v23 = vld [vmem:[%s1807_s9 + $0xc8] sm:$0xff]  ;;  %s2912_s13 = smov (%p1298_p11, %s1297_s13), 0  ;;  %1190 = vst [vmem:[%s1803_s8 + $0x88] sm:$0xff] %v1189_v22 }
  0x8c   : >> { %v1177_v16 = vld [vmem:[%s1807_s9 + $0x100] sm:$0xff]  ;;  %1176 = vst [vmem:[%s1803_s8 + $0xc0] sm:$0xff] %v1175_v15  ;;  %1192 = vst [vmem:[%s1803_s8 + $0xc8] sm:$0xff] %v1191_v23  ;;  %v1193_v24 = vld [vmem:[%s1807_s9 + $0x108] sm:$0xff]  ;;  %s1638_s14 = sshll.u32 %s2912_s13, 9  ;;  %s2902_s10 = smov %s2912_s13 }
  0x8d   : >> { %v1179_v17 = vld [vmem:[%s1807_s9 + $0x140] sm:$0xff]  ;;  %1178 = vst [vmem:[%s1803_s8 + $0x100] sm:$0xff] %v1177_v16  ;;  %v1195_v25 = vld [vmem:[%s1807_s9 + $0x148] sm:$0xff]  ;;  %1194 = vst [vmem:[%s1803_s8 + $0x108] sm:$0xff] %v1193_v24  ;;  %s2740_s15 = scalar_lea.vmem %s1906_s28, %s1638_s14 [#allocation3]   ;;  %s2743_s16 = scalar_lea.vmem %s2667_s5, %s1638_s14  }
  0x8e   : >> { %1180 = vst [vmem:[%s1803_s8 + $0x140] sm:$0xff] %v1179_v17  ;;  %v1181_v18 = vld [vmem:[%s1807_s9 + $0x180] sm:$0xff]  ;;  %v1197_v26 = vld [vmem:[%s1807_s9 + $0x188] sm:$0xff]  ;;  %1196 = vst [vmem:[%s1803_s8 + $0x148] sm:$0xff] %v1195_v25 }
  0x8f   : >> { %v1183_v19 = vld [vmem:[%s1807_s9 + $0x1c0] sm:$0xff]  ;;  %1182 = vst [vmem:[%s1803_s8 + $0x180] sm:$0xff] %v1181_v18  ;;  %1198 = vst [vmem:[%s1803_s8 + $0x188] sm:$0xff] %v1197_v26  ;;  %v1199_v27 = vld [vmem:[%s1807_s9 + $0x1c8] sm:$0xff] }
  0x90   : >> { %1184 = vst [vmem:[%s1803_s8 + $0x1c0] sm:$0xff] %v1183_v19  ;;  %v1203_v29 = vld [vmem:[%s1807_s9 + $0x50] sm:$0xff]  ;;  %1200 = vst [vmem:[%s1803_s8 + $0x1c8] sm:$0xff] %v1199_v27  ;;  %v1217_v36 = vld [vmem:[%s1807_s9 + $0x18] sm:$0xff] }
  0x91   : >> { %1202 = vst [vmem:[%s1803_s8 + $0x10] sm:$0xff] %v1201_v28  ;;  %1204 = vst [vmem:[%s1803_s8 + $0x50] sm:$0xff] %v1203_v29  ;;  %v1205_v30 = vld [vmem:[%s1807_s9 + $0x90] sm:$0xff]  ;;  %v1219_v37 = vld [vmem:[%s1807_s9 + $0x58] sm:$0xff] }
  0x92   : >> { %v1207_v31 = vld [vmem:[%s1807_s9 + $0xd0] sm:$0xff]  ;;  %1206 = vst [vmem:[%s1803_s8 + $0x90] sm:$0xff] %v1205_v30  ;;  %v1221_v38 = vld [vmem:[%s1807_s9 + $0x98] sm:$0xff]  ;;  %1218 = vst [vmem:[%s1803_s8 + $0x18] sm:$0xff] %v1217_v36 }
  0x93   : >> { %v1209_v32 = vld [vmem:[%s1807_s9 + $0x110] sm:$0xff]  ;;  %1208 = vst [vmem:[%s1803_s8 + $0xd0] sm:$0xff] %v1207_v31  ;;  %1220 = vst [vmem:[%s1803_s8 + $0x58] sm:$0xff] %v1219_v37  ;;  %v1223_v39 = vld [vmem:[%s1807_s9 + $0xd8] sm:$0xff] }
  0x94   : >> { %1210 = vst [vmem:[%s1803_s8 + $0x110] sm:$0xff] %v1209_v32  ;;  %v1211_v33 = vld [vmem:[%s1807_s9 + $0x150] sm:$0xff]  ;;  %1222 = vst [vmem:[%s1803_s8 + $0x98] sm:$0xff] %v1221_v38  ;;  %v1225_v40 = vld [vmem:[%s1807_s9 + $0x118] sm:$0xff] }
  0x95   : >> { %v1213_v34 = vld [vmem:[%s1807_s9 + $0x190] sm:$0xff]  ;;  %1212 = vst [vmem:[%s1803_s8 + $0x150] sm:$0xff] %v1211_v33  ;;  %v1227_v41 = vld [vmem:[%s1807_s9 + $0x158] sm:$0xff]  ;;  %1224 = vst [vmem:[%s1803_s8 + $0xd8] sm:$0xff] %v1223_v39 }
  0x96   : >> { %v1215_v35 = vld [vmem:[%s1807_s9 + $0x1d0] sm:$0xff]  ;;  %1214 = vst [vmem:[%s1803_s8 + $0x190] sm:$0xff] %v1213_v34  ;;  %1226 = vst [vmem:[%s1803_s8 + $0x118] sm:$0xff] %v1225_v40  ;;  %v1229_v42 = vld [vmem:[%s1807_s9 + $0x198] sm:$0xff] }
  0x97   : >> { %1216 = vst [vmem:[%s1803_s8 + $0x1d0] sm:$0xff] %v1215_v35  ;;  %1228 = vst [vmem:[%s1803_s8 + $0x158] sm:$0xff] %v1227_v41  ;;  %v1231_v43 = vld [vmem:[%s1807_s9 + $0x1d8] sm:$0xff]  ;;  %v1233_v44 = vld [vmem:[%s1807_s9 + $0x20] sm:$0xff] }
  0x98   : >> { %1230 = vst [vmem:[%s1803_s8 + $0x198] sm:$0xff] %v1229_v42  ;;  %1232 = vst [vmem:[%s1803_s8 + $0x1d8] sm:$0xff] %v1231_v43  ;;  %v1235_v45 = vld [vmem:[%s1807_s9 + $0x60] sm:$0xff]  ;;  %v1249_v52 = vld [vmem:[%s1807_s9 + $0x28] sm:$0xff] }
  0x99   : >> { %1234 = vst [vmem:[%s1803_s8 + $0x20] sm:$0xff] %v1233_v44  ;;  %v1237_v46 = vld [vmem:[%s1807_s9 + $0xa0] sm:$0xff]  ;;  %1236 = vst [vmem:[%s1803_s8 + $0x60] sm:$0xff] %v1235_v45  ;;  %v1251_v53 = vld [vmem:[%s1807_s9 + $0x68] sm:$0xff] }
  0x9a   : >> { %v1239_v47 = vld [vmem:[%s1807_s9 + $0xe0] sm:$0xff]  ;;  %1238 = vst [vmem:[%s1803_s8 + $0xa0] sm:$0xff] %v1237_v46  ;;  %1250 = vst [vmem:[%s1803_s8 + $0x28] sm:$0xff] %v1249_v52  ;;  %v1253_v54 = vld [vmem:[%s1807_s9 + $0xa8] sm:$0xff] }
  0x9b   : >> { %1240 = vst [vmem:[%s1803_s8 + $0xe0] sm:$0xff] %v1239_v47  ;;  %v1241_v48 = vld [vmem:[%s1807_s9 + $0x120] sm:$0xff]  ;;  %1252 = vst [vmem:[%s1803_s8 + $0x68] sm:$0xff] %v1251_v53  ;;  %v1255_v55 = vld [vmem:[%s1807_s9 + $0xe8] sm:$0xff] }
  0x9c   : >> { %v1243_v49 = vld [vmem:[%s1807_s9 + $0x160] sm:$0xff]  ;;  %1242 = vst [vmem:[%s1803_s8 + $0x120] sm:$0xff] %v1241_v48  ;;  %v1257_v56 = vld [vmem:[%s1807_s9 + $0x128] sm:$0xff]  ;;  %1254 = vst [vmem:[%s1803_s8 + $0xa8] sm:$0xff] %v1253_v54 }
  0x9d   : >> { %v1245_v50 = vld [vmem:[%s1807_s9 + $0x1a0] sm:$0xff]  ;;  %1244 = vst [vmem:[%s1803_s8 + $0x160] sm:$0xff] %v1243_v49  ;;  %1256 = vst [vmem:[%s1803_s8 + $0xe8] sm:$0xff] %v1255_v55  ;;  %v1259_v57 = vld [vmem:[%s1807_s9 + $0x168] sm:$0xff] }
  0x9e   : >> { %1246 = vst [vmem:[%s1803_s8 + $0x1a0] sm:$0xff] %v1245_v50  ;;  %v1247_v51 = vld [vmem:[%s1807_s9 + $0x1e0] sm:$0xff]  ;;  %1258 = vst [vmem:[%s1803_s8 + $0x128] sm:$0xff] %v1257_v56  ;;  %v1261_v58 = vld [vmem:[%s1807_s9 + $0x1a8] sm:$0xff] }
  0x9f   : >> { %1248 = vst [vmem:[%s1803_s8 + $0x1e0] sm:$0xff] %v1247_v51  ;;  %v1263_v59 = vld [vmem:[%s1807_s9 + $0x1e8] sm:$0xff]  ;;  %1260 = vst [vmem:[%s1803_s8 + $0x168] sm:$0xff] %v1259_v57  ;;  %v1265_v60 = vld [vmem:[%s1807_s9 + $0x30] sm:$0xff] }
  0xa0   : >> { %1262 = vst [vmem:[%s1803_s8 + $0x1a8] sm:$0xff] %v1261_v58  ;;  %1264 = vst [vmem:[%s1803_s8 + $0x1e8] sm:$0xff] %v1263_v59  ;;  %v1267_v61 = vld [vmem:[%s1807_s9 + $0x70] sm:$0xff]  ;;  %v1281_v5 = vld [vmem:[%s1807_s9 + $0x38] sm:$0xff] }
  0xa1   : >> { %v1269_v62 = vld [vmem:[%s1807_s9 + $0xb0] sm:$0xff]  ;;  %1266 = vst [vmem:[%s1803_s8 + $0x30] sm:$0xff] %v1265_v60  ;;  %1268 = vst [vmem:[%s1803_s8 + $0x70] sm:$0xff] %v1267_v61  ;;  %v1283_v6 = vld [vmem:[%s1807_s9 + $0x78] sm:$0xff] }
  0xa2   : >> { %1270 = vst [vmem:[%s1803_s8 + $0xb0] sm:$0xff] %v1269_v62  ;;  %v1271_v63 = vld [vmem:[%s1807_s9 + $0xf0] sm:$0xff]  ;;  %1282 = vst [vmem:[%s1803_s8 + $0x38] sm:$0xff] %v1281_v5  ;;  %v1285_v8 = vld [vmem:[%s1807_s9 + $0xb8] sm:$0xff] }
  0xa3   : >> { %v1273_v1 = vld [vmem:[%s1807_s9 + $0x130] sm:$0xff]  ;;  %1272 = vst [vmem:[%s1803_s8 + $0xf0] sm:$0xff] %v1271_v63  ;;  %v1287_v9 = vld [vmem:[%s1807_s9 + $0xf8] sm:$0xff]  ;;  %1284 = vst [vmem:[%s1803_s8 + $0x78] sm:$0xff] %v1283_v6 }
  0xa4   : >> { %v1275_v2 = vld [vmem:[%s1807_s9 + $0x170] sm:$0xff]  ;;  %1274 = vst [vmem:[%s1803_s8 + $0x130] sm:$0xff] %v1273_v1  ;;  %1286 = vst [vmem:[%s1803_s8 + $0xb8] sm:$0xff] %v1285_v8  ;;  %v1289_v10 = vld [vmem:[%s1807_s9 + $0x138] sm:$0xff]  ;;  %1165 = sbr.rel (!%p1162_p12) target bundleno = 136 (0x88), region = 90 }
  0xa5   : >> { %1276 = vst [vmem:[%s1803_s8 + $0x170] sm:$0xff] %v1275_v2  ;;  %v1277_v3 = vld [vmem:[%s1807_s9 + $0x1b0] sm:$0xff]  ;;  %1288 = vst [vmem:[%s1803_s8 + $0xf8] sm:$0xff] %v1287_v9  ;;  %v1291_v11 = vld [vmem:[%s1807_s9 + $0x178] sm:$0xff] }
  0xa6   : >> { %v1279_v4 = vld [vmem:[%s1807_s9 + $0x1f0] sm:$0xff]  ;;  %1278 = vst [vmem:[%s1803_s8 + $0x1b0] sm:$0xff] %v1277_v3  ;;  %v1293_v12 = vld [vmem:[%s1807_s9 + $0x1b8] sm:$0xff]  ;;  %1290 = vst [vmem:[%s1803_s8 + $0x138] sm:$0xff] %v1289_v10 }
  0xa7   : >> { %1280 = vst [vmem:[%s1803_s8 + $0x1f0] sm:$0xff] %v1279_v4  ;;  %1292 = vst [vmem:[%s1803_s8 + $0x178] sm:$0xff] %v1291_v11  ;;  %v1295_v13 = vld [vmem:[%s1807_s9 + $0x1f8] sm:$0xff]  ;;  %s2901_s9 = smov %s2740_s15 }
  0xa8   : >> { %1294 = vst [vmem:[%s1803_s8 + $0x1b8] sm:$0xff] %v1293_v12  ;;  %1296 = vst [vmem:[%s1803_s8 + $0x1f8] sm:$0xff] %v1295_v13  ;;  %s2900_s8 = smov %s2743_s16 }
  0xa9 PF: > { %s2848_s18 = sand.u32 7, %s2910_s29   ;;  %s1652_s19 = sshll.u32 %s2673_s7, 9 }
  0xaa   : > { %s2852_s20 = scalar_lea.vmem %s1906_s28, %s1652_s19 [#allocation3]   ;;  %s2855_s21 = scalar_lea.vmem %s2667_s5, %s1652_s19  }
  0xab   : > { %p1643_p13 = scmp.le.s32.totalorder %s2848_s18, 0 }
  0xac   : > { %s2903_s22 = smov (!%p1643_p13), %s2855_s21  ;;  %s2904_s23 = smov (!%p1643_p13), %s2852_s20 }
  0xad   : > { %1403 = sbr.rel (%p1643_p13) target bundleno = 186 (0xba), region = 95  ;;  %s2864_s24 = smov (!%p1643_p13), 0  }
  0xae   : > { %s2866_s25 = smov (!%p1643_p13), 0  }
  0xb2 LB: >> { %v1320_v0 = vld [vmem:[%s1823_s23] sm:$0xff]  ;;  %v1322_v7 = vld [vmem:[%s1823_s23 + $0x8] sm:$0xff]  ;;  %v1324_v14 = vld [vmem:[%s1823_s23 + $0x10] sm:$0xff]  ;;  %s1336_s26 = sadd.s32 1, %s1827_s24  ;;  %s1314_s25 = sadd.s32 1, %s1831_s25   ;;  %s1831_s25 = sphi %s2866_s25, %s1314_s25   ;;  %s1827_s24 = sphi %s2864_s24, %s2905_s24   ;;  %s1823_s23 = sphi %s2904_s23, %s1341_s23   ;;  %s1819_s22 = sphi %s2903_s22, %s1342_s22  }
  0xb3   : >> { %1321 = vst [vmem:[%s1819_s22] sm:$0xff] %v1320_v0  ;;  %1323 = vst [vmem:[%s1819_s22 + $0x8] sm:$0xff] %v1322_v7  ;;  %v1326_v15 = vld [vmem:[%s1823_s23 + $0x18] sm:$0xff]  ;;  %v1328_v16 = vld [vmem:[%s1823_s23 + $0x20] sm:$0xff]  ;;  %p1337_p0 = scmp.ge.s32.totalorder %s1336_s26, %s2848_s18  ;;  %p1313_p1 = scmp.ge.s32.totalorder %s1314_s25, %s2848_s18 }
  0xb4   : >> { %1325 = vst [vmem:[%s1819_s22 + $0x10] sm:$0xff] %v1324_v14  ;;  %v1330_v17 = vld [vmem:[%s1823_s23 + $0x28] sm:$0xff]  ;;  %1327 = vst [vmem:[%s1819_s22 + $0x18] sm:$0xff] %v1326_v15  ;;  %v1332_v18 = vld [vmem:[%s1823_s23 + $0x30] sm:$0xff] }
  0xb5   : >> { %1329 = vst [vmem:[%s1819_s22 + $0x20] sm:$0xff] %v1328_v16  ;;  %1331 = vst [vmem:[%s1819_s22 + $0x28] sm:$0xff] %v1330_v17  ;;  %v1334_v19 = vld [vmem:[%s1823_s23 + $0x38] sm:$0xff]  ;;  %s2914_s26 = smov (%p1337_p0, %s1336_s26), 0  ;;  %1316 = sbr.rel (!%p1313_p1) target bundleno = 178 (0xb2), region = 101 }
  0xb6   : >> { %1333 = vst [vmem:[%s1819_s22 + $0x30] sm:$0xff] %v1332_v18  ;;  %1335 = vst [vmem:[%s1819_s22 + $0x38] sm:$0xff] %v1334_v19  ;;  %s1644_s27 = sshll.u32 %s2914_s26, 6  ;;  %s2905_s24 = smov %s2914_s26 }
  0xb7   : >> { %s1341_s23 = scalar_lea.vmem %s2852_s20, %s1644_s27 [#allocation3]   ;;  %s1342_s22 = scalar_lea.vmem %s2855_s21, %s1644_s27  }
  0xba PF: > { %p10_p2 = scmp.ge.s32.totalorder %s1865_s0, 4   ;;  %s2906_s11 = smov %s1795_s12 }
  0xbb   : > { %s2907_s12 = smov %s1872_s17  ;;  %s2908_s13 = smov %s1865_s0 }
  0xbc   :  { %12 = sbr.rel (!%p10_p2) target bundleno = 4 (0x4), region = 112 }

</bundles_post_ra>
